<compile_context>
chip_gen: v7x
topology: tpu7x:2x2x1
jax: 0.10.0
libtpu: 0.0.40
codegen_flags: <defaults>
</compile_context>

<pallas_src>
import functools

import jax
import jax.numpy as jnp
from jax.experimental import pallas as pl
from jax.experimental.pallas import tpu as pltpu

CP = 128            # all channel dims padded to one lane-dense 128-wide group
NUM_CLASS = 10
CODE_LENGTH = 12
MID_DIM = 32        # resnet32 path in the module
FEADIM = 64


# ---------------------------------------------------------------------------
# Pallas kernels
# ---------------------------------------------------------------------------

def _gemm_bias_act_kernel(x_ref, w_ref, b_ref, o_ref, *, relu):
    # y = x @ w + b (bf16 operands, f32 accumulate/epilogue), optional ReLU.
    y = jnp.dot(x_ref[...], w_ref[...], preferred_element_type=jnp.float32)
    y = y + b_ref[...]
    if relu:
        y = jnp.maximum(y, 0.0)
    o_ref[...] = y.astype(o_ref.dtype)


def _block_first_kernel(p_ref, w1_ref, b1_ref, wd_ref, bd_ref, o1_ref, sc_ref):
    # BasicBlock first half: conv1(3x3)+BN+ReLU and the 1x1(+BN) shortcut
    # fused into one call.  The 1x1 shortcut conv reads exactly the centre tap
    # (tap index 4) of the 3x3 im2col patches, so both GEMMs share one DMA of
    # the patch tile and the shortcut never needs a separate kernel.
    p = p_ref[...]
    y1 = jnp.dot(p, w1_ref[...], preferred_element_type=jnp.float32) + b1_ref[...]
    o1_ref[...] = jnp.maximum(y1, 0.0).astype(o1_ref.dtype)
    center = p[:, 4 * CP:5 * CP]                                   # lane-aligned slice
    sc = jnp.dot(center, wd_ref[...], preferred_element_type=jnp.float32) + bd_ref[...]
    sc_ref[...] = sc.astype(sc_ref.dtype)


def _block_second_kernel(p_ref, w_ref, b_ref, sc_ref, o_ref):
    # BasicBlock second half: conv2(3x3)+BN + residual add + ReLU fused.
    y = jnp.dot(p_ref[...], w_ref[...], preferred_element_type=jnp.float32)
    y = y + b_ref[...] + sc_ref[...].astype(jnp.float32)
    o_ref[...] = jnp.maximum(y, 0.0).astype(o_ref.dtype)


def _head_main_kernel(x_ref, cw, cb, h1w, h1b, h2w, h2b, h3w, h3b,
                      fea_ref, logits_ref, code_ref):
    # Global avg-pool + classifier + 3-layer hash MLP in ONE kernel; the tiny
    # (N, 128) activations never leave VMEM/vregs between layers.
    x = x_ref[...].astype(jnp.float32)                 # (N, H*W, CP)
    fea = jnp.mean(x, axis=1)                          # (N, CP)
    fea_ref[...] = fea
    fb = fea.astype(jnp.bfloat16)
    logits_ref[...] = jnp.dot(fb, cw[...], preferred_element_type=jnp.float32) + cb[...]
    h = jnp.maximum(jnp.dot(fb, h1w[...], preferred_element_type=jnp.float32) + h1b[...], 0.0)
    # TODO(synk): Dropout(0.5) is identity in eval mode; training-mode mask not implemented.
    h = jnp.maximum(jnp.dot(h.astype(jnp.bfloat16), h2w[...],
                            preferred_element_type=jnp.float32) + h2b[...], 0.0)
    code_ref[...] = jnp.dot(h.astype(jnp.bfloat16), h3w[...],
                            preferred_element_type=jnp.float32) + h3b[...]


def _head_mid_kernel(x_ref, w41, b41, mw, mb, y_ref, pool_ref, mlog_ref):
    # conv4_1 (1x1 conv + ReLU) + global max-pool + mcls fused in one kernel.
    for n in range(x_ref.shape[0]):                    # batch unrolled (tiny)
        xn = x_ref[n]                                  # (H*W, CP) bf16
        y = jnp.maximum(jnp.dot(xn, w41[...], preferred_element_type=jnp.float32)
                        + b41[...], 0.0)
        y_ref[n] = y.astype(y_ref.dtype)
        pool = jnp.max(y, axis=0, keepdims=True)       # (1, CP)
        pool_ref[pl.ds(n, 1), :] = pool
        mlog_ref[pl.ds(n, 1), :] = (jnp.dot(pool.astype(jnp.bfloat16), mw[...],
                                            preferred_element_type=jnp.float32) + mb[...])


# ---------------------------------------------------------------------------
# pallas_call wrappers
# ---------------------------------------------------------------------------

def _full_spec(shape):
    # whole-array block (small operands; block == full array dims is legal).
    return pl.BlockSpec(shape, lambda i: (0,) * len(shape))


def _row_tiled_spec(shape, tm):
    nd = len(shape)
    return pl.BlockSpec((tm,) + tuple(shape[1:]), lambda i: (i,) + (0,) * (nd - 1))


_PARALLEL = pltpu.CompilerParams(dimension_semantics=("parallel",))


def gemm_bias_act(p, w, b, relu=True):
    M, K = p.shape
    Nc = w.shape[1]
    tm = min(M, 256)
    return pl.pallas_call(
        functools.partial(_gemm_bias_act_kernel, relu=relu),
        grid=(M // tm,),
        out_shape=jax.ShapeDtypeStruct((M, Nc), jnp.bfloat16),
        in_specs=[_row_tiled_spec((M, K), tm), _full_spec((K, Nc)), _full_spec((1, Nc))],
        out_specs=_row_tiled_spec((M, Nc), tm),
        compiler_params=_PARALLEL,
    )(p, w, b)


def block_first(p, w1, b1, wd, bd):
    M, K = p.shape
    tm = min(M, 256)
    return pl.pallas_call(
        _block_first_kernel,
        grid=(M // tm,),
        out_shape=(jax.ShapeDtypeStruct((M, CP), jnp.bfloat16),
                   jax.ShapeDtypeStruct((M, CP), jnp.bfloat16)),
        in_specs=[_row_tiled_spec((M, K), tm), _full_spec((K, CP)), _full_spec((1, CP)),
                  _full_spec((CP, CP)), _full_spec((1, CP))],
        out_specs=(_row_tiled_spec((M, CP), tm), _row_tiled_spec((M, CP), tm)),
        compiler_params=_PARALLEL,
    )(p, w1, b1, wd, bd)


def block_second(p, w, b, sc):
    M, K = p.shape
    tm = min(M, 256)
    return pl.pallas_call(
        _block_second_kernel,
        grid=(M // tm,),
        out_shape=jax.ShapeDtypeStruct((M, CP), jnp.bfloat16),
        in_specs=[_row_tiled_spec((M, K), tm), _full_spec((K, CP)), _full_spec((1, CP)),
                  _row_tiled_spec((M, CP), tm)],
        out_specs=_row_tiled_spec((M, CP), tm),
        compiler_params=_PARALLEL,
    )(p, w, b, sc)


def head_main(x3, prm):
    Nn, S, _ = x3.shape
    wspecs = [_full_spec((CP, CP)), _full_spec((1, CP))] * 4
    return pl.pallas_call(
        _head_main_kernel,
        grid=(1,),
        out_shape=(jax.ShapeDtypeStruct((Nn, CP), jnp.float32),) * 3,
        in_specs=[_full_spec((Nn, S, CP))] + wspecs,
        out_specs=(_full_spec((Nn, CP)),) * 3,
    )(x3, prm['cls_w'], prm['cls_b'], prm['hash1_w'], prm['hash1_b'],
      prm['hash2_w'], prm['hash2_b'], prm['hash3_w'], prm['hash3_b'])


def head_mid(x3, prm):
    Nn, S, _ = x3.shape
    return pl.pallas_call(
        _head_mid_kernel,
        grid=(1,),
        out_shape=(jax.ShapeDtypeStruct((Nn, S, CP), jnp.bfloat16),
                   jax.ShapeDtypeStruct((Nn, CP), jnp.float32),
                   jax.ShapeDtypeStruct((Nn, CP), jnp.float32)),
        in_specs=[_full_spec((Nn, S, CP)), _full_spec((CP, CP)), _full_spec((1, CP)),
                  _full_spec((CP, CP)), _full_spec((1, CP))],
        out_specs=(_full_spec((Nn, S, CP)), _full_spec((Nn, CP)), _full_spec((Nn, CP))),
    )(x3, prm['c41_w'], prm['c41_b'], prm['mcls_w'], prm['mcls_b'])


# ---------------------------------------------------------------------------
# Plain-JAX glue
# ---------------------------------------------------------------------------

def im2col(x_nhwc, k, stride, padding):
    """Patch extraction (glue).  Tap order i*k+j matches the weight layout, so
    the centre tap of a 3x3 conv is columns [4*CP, 5*CP)."""
    N, H, W, C = x_nhwc.shape
    xp = jnp.pad(x_nhwc, ((0, 0), (padding, padding), (padding, padding), (0, 0)))
    Ho = (H + 2 * padding - k) // stride + 1
    Wo = (W + 2 * padding - k) // stride + 1
    cols = [xp[:, i:i + stride * Ho:stride, j:j + stride * Wo:stride, :]
            for i in range(k) for j in range(k)]
    patches = jnp.concatenate(cols, axis=-1).reshape(N * Ho * Wo, k * k * C)
    return patches, (Ho, Wo)


def basic_block(x_nhwc, blk, stride):
    """CIFAR-ResNet BasicBlock = 2 fused Pallas calls."""
    N = x_nhwc.shape[0]
    pat1, (Ho, Wo) = im2col(x_nhwc, 3, stride, 1)
    out1_flat, sc_flat = block_first(pat1, blk['w1'], blk['b1'], blk['wd'], blk['bd'])
    out1 = out1_flat.reshape(N, Ho, Wo, CP)
    pat2, _ = im2col(out1, 3, 1, 1)
    out_flat = block_second(pat2, blk['w2'], blk['b2'], sc_flat)
    return out_flat.reshape(N, Ho, Wo, CP)


# ---------------------------------------------------------------------------
# Parameters: GEMM-ready, channel-padded to 128, BN folded, bf16 weights
# ---------------------------------------------------------------------------

def init_params(key):
    keys = iter(jax.random.split(key, 64))
    eps = 1e-5
    # PyTorch BN defaults (gamma=1, beta=0, mean=0, var=1) folded for inference.
    bn_scale = 1.0 / (1.0 + eps) ** 0.5
    zero_b = jnp.zeros((1, CP), jnp.float32)

    def conv_gemm(cout, cin, k, *, fold_bn=True):
        fan_out = cout * k * k                      # kaiming_normal_(fan_out, relu)
        w = jax.random.normal(next(keys), (cout, cin, k, k), jnp.float32) * ((2.0 / fan_out) ** 0.5)
        w = jnp.transpose(w, (2, 3, 1, 0))          # (k, k, cin, cout)
        w = jnp.pad(w, ((0, 0), (0, 0), (0, CP - cin), (0, CP - cout)))
        if fold_bn:
            w = w * bn_scale                        # fold BN scale into weight columns
        return w.reshape(k * k * CP, CP).astype(jnp.bfloat16)

    def lin_wb(cout, cin):
        bound = 1.0 / (cin ** 0.5)
        w = jax.random.uniform(next(keys), (cout, cin), jnp.float32, -bound, bound)
        b = jax.random.uniform(next(keys), (cout,), jnp.float32, -bound, bound)
        wp = jnp.pad(w.T, ((0, CP - cin), (0, CP - cout))).astype(jnp.bfloat16)  # pre-transposed
        bp = jnp.pad(b, (0, CP - cout)).reshape(1, CP)
        return wp, bp

    def block(cin, cout, down):
        blk = {'w1': conv_gemm(cout, cin, 3), 'b1': zero_b,
               'w2': conv_gemm(cout, cout, 3), 'b2': zero_b}
        if down:
            blk['wd'] = conv_gemm(cout, cin, 1)     # 1x1 conv + BN shortcut
            blk['bd'] = zero_b
        else:
            blk['wd'] = jnp.eye(CP, dtype=jnp.bfloat16)   # identity shortcut
            blk['bd'] = zero_b
        return blk

    params = {
        'stem_w': conv_gemm(16, 3, 3), 'stem_b': zero_b,
        'layer1': block(16, 16, False),             # part of self.conv3
        'layer2': block(16, MID_DIM, True),         # self.conv4
        'layer3': block(MID_DIM, FEADIM, True),     # self.conv5
        'c41_w': conv_gemm(MID_DIM, MID_DIM, 1, fold_bn=False),  # conv4_1 (bias=True)
        'c41_b': zero_b,
    }
    params['cls_w'], params['cls_b'] = lin_wb(NUM_CLASS, FEADIM)
    params['mcls_w'], params['mcls_b'] = lin_wb(NUM_CLASS, MID_DIM)
    params['hash1_w'], params['hash1_b'] = lin_wb(FEADIM, FEADIM)
    params['hash2_w'], params['hash2_b'] = lin_wb(FEADIM, FEADIM)
    params['hash3_w'], params['hash3_b'] = lin_wb(CODE_LENGTH, FEADIM)
    return params


# ---------------------------------------------------------------------------
# Forward pass (conf: netname='resnet32', midlevel=True, isdetach=True,
#               HTC=True -> target_coding, num_class=10, code_length=12)
# ---------------------------------------------------------------------------

def resnet_forward(params, x_nchw):
    prm = params
    N, Cin = x_nchw.shape[0], x_nchw.shape[1]
    x = jnp.transpose(x_nchw, (0, 2, 3, 1)).astype(jnp.float32)        # NCHW -> NHWC
    x = jnp.pad(x, ((0, 0), (0, 0), (0, 0), (0, CP - Cin))).astype(jnp.bfloat16)

    # conv3 = stem (conv1+bn1+relu) + layer1
    pat, (Ho, Wo) = im2col(x, 3, 1, 1)
    stem = gemm_bias_act(pat, prm['stem_w'], prm['stem_b'], relu=True).reshape(N, Ho, Wo, CP)
    conv3 = basic_block(stem, prm['layer1'], stride=1)
    conv4 = basic_block(conv3, prm['layer2'], stride=2)
    conv5 = basic_block(conv4, prm['layer3'], stride=2)

    # main head: avg-pool + classifier + hash MLP, one fused Pallas call
    _, H5, W5, _ = conv5.shape
    fea_pad, logits_pad, code_pad = head_main(conv5.reshape(N, H5 * W5, CP), prm)

    # midlevel head (isdetach=True): conv4_1(1x1)+ReLU + max-pool + mcls, one call
    _, H4, W4, _ = conv4.shape
    c4 = jax.lax.stop_gradient(conv4)
    conv41_pad, pool_pad, mlog_pad = head_mid(c4.reshape(N, H4 * W4, CP), prm)

    # strip channel padding / match PyTorch NCHW convention
    logits = logits_pad[:, :NUM_CLASS]
    fea_pool = fea_pad[:, :FEADIM]
    xlocal_attr = code_pad[:, :CODE_LENGTH]
    mlogits = mlog_pad[:, :NUM_CLASS]
    pool4_1 = pool_pad[:, :MID_DIM]
    conv5_out = jnp.transpose(conv5[..., :FEADIM].astype(jnp.float32), (0, 3, 1, 2))
    conv4_1_out = jnp.transpose(
        conv41_pad.reshape(N, H4, W4, CP)[..., :MID_DIM].astype(jnp.float32), (0, 3, 1, 2))
    return logits, [conv5_out, conv4_1_out], mlogits, [fea_pool, pool4_1], xlocal_attr


# ---------------------------------------------------------------------------

if __name__ == "__main__":
    key = jax.random.PRNGKey(0)
    pkey, xkey = jax.random.split(key)
    params = init_params(pkey)

    x = jax.random.normal(xkey, (2, 3, 16, 16), jnp.float32)  # NCHW, small

    outs = resnet_forward(params, x)
    jax.block_until_ready(outs)

    logits, (conv5, conv4_1), mlogits, (fea_pool, pool4_1), xlocal_attr = outs
    assert logits.shape == (2, 10)
    assert conv5.shape == (2, 64, 4, 4)
    assert conv4_1.shape == (2, 32, 8, 8)
    assert mlogits.shape == (2, 10)
    assert fea_pool.shape == (2, 64)
    assert pool4_1.shape == (2, 32)
    assert xlocal_attr.shape == (2, 12)
    print("KERNEL_OK")
</pallas_src>

<mosaic_0001>
module attributes {stable_mosaic.version = 11 : i64} {
  func.func @_gemm_bias_act_kernel(%arg0: i32, %arg1: memref<256x1152xbf16, #tpu.memory_space<vmem>>, %arg2: memref<1152x128xbf16, #tpu.memory_space<vmem>>, %arg3: memref<1x128xf32, #tpu.memory_space<vmem>>, %arg4: memref<256x128xbf16, #tpu.memory_space<vmem>>) attributes {dimension_semantics = [#tpu.dimension_semantics<parallel>], iteration_bounds = array<i64: 2>, scalar_prefetch = 0 : i64, scratch_operands = 0 : i64, tpu.core_type = #tpu.core_type<tc>, window_params = [{transform_indices = @transform_0, window_bounds = array<i64: 256, 1152>}, {pipeline_mode = #tpu.pipeline_mode<synchronous>, transform_indices = @transform_1, window_bounds = array<i64: 1152, 128>}, {pipeline_mode = #tpu.pipeline_mode<synchronous>, transform_indices = @transform_2, window_bounds = array<i64: 1, 128>}, {transform_indices = @transform_3, window_bounds = array<i64: 256, 128>}]} {
    %c0 = arith.constant 0 : index
    %c0_0 = arith.constant 0 : index
    %0 = vector.load %arg1[%c0, %c0_0] : memref<256x1152xbf16, #tpu.memory_space<vmem>>, vector<256x1152xbf16>
    %c0_1 = arith.constant 0 : index
    %c0_2 = arith.constant 0 : index
    %1 = vector.load %arg2[%c0_1, %c0_2] : memref<1152x128xbf16, #tpu.memory_space<vmem>>, vector<1152x128xbf16>
    %cst = arith.constant dense<0.000000e+00> : vector<256x128xf32>
    %2 = tpu.matmul %0, %1, %cst {dimension_numbers = #tpu.dot_dimension_numbers<[1], [0], [0], [1], [0, 0, 1, 1], [], []>} : vector<256x1152xbf16>, vector<1152x128xbf16>, vector<256x128xf32> -> vector<256x128xf32>
    %c0_3 = arith.constant 0 : index
    %c0_4 = arith.constant 0 : index
    %3 = vector.load %arg3[%c0_3, %c0_4] : memref<1x128xf32, #tpu.memory_space<vmem>>, vector<1x128xf32>
    %4 = vector.broadcast %3 : vector<1x128xf32> to vector<256x128xf32>
    %5 = arith.addf %2, %4 : vector<256x128xf32>
    %cst_5 = arith.constant 0.000000e+00 : f32
    %6 = vector.broadcast %cst_5 : f32 to vector<256x128xf32>
    %7 = arith.maximumf %5, %6 : vector<256x128xf32>
    %8 = arith.truncf %7 : vector<256x128xf32> to vector<256x128xbf16>
    %c0_6 = arith.constant 0 : index
    %c0_7 = arith.constant 0 : index
    %9 = vector.load %arg4[%c0_6, %c0_7] : memref<256x128xbf16, #tpu.memory_space<vmem>>, vector<256x128xbf16>
    tpu.vector_store %arg4[%c0_6, %c0_7], %8 {strides = array<i32>} : memref<256x128xbf16, #tpu.memory_space<vmem>>, vector<256x128xbf16>,
    return
  }
  func.func @transform_0(%arg0: i32) -> (i32, i32) {
    %c0_i32 = arith.constant 0 : i32
    %c0_i32_0 = arith.constant 0 : i32
    return %arg0, %c0_i32 : i32, i32
  }
  func.func @transform_1(%arg0: i32) -> (i32, i32) {
    %c0_i32 = arith.constant 0 : i32
    %c0_i32_0 = arith.constant 0 : i32
    %c0_i32_1 = arith.constant 0 : i32
    return %c0_i32, %c0_i32_0 : i32, i32
  }
  func.func @transform_2(%arg0: i32) -> (i32, i32) {
    %c0_i32 = arith.constant 0 : i32
    %c0_i32_0 = arith.constant 0 : i32
    %c0_i32_1 = arith.constant 0 : i32
    return %c0_i32, %c0_i32_0 : i32, i32
  }
  func.func @transform_3(%arg0: i32) -> (i32, i32) {
    %c0_i32 = arith.constant 0 : i32
    %c0_i32_0 = arith.constant 0 : i32
    return %arg0, %c0_i32 : i32, i32
  }
}

</mosaic_0001>

<bundles_post_ra>
// kernel: tpu_custom_call.1
= control target key start
LH: loop header
LB: loop body
LE: loop exit
PB: predicated region body
PF: predicated region fallthrough
CT: control target
= control target key end

     0   :  { %8 = vsyncpa [#allocation3], 0  ;;  %s5053_s0 = inlined_call_operand.hbm [shape: bf16[512,1152], index: 0, kind: input, shape index: {}]   ;;  %s5054_s1 = inlined_call_operand.hbm [shape: bf16[1152,128], index: 1, kind: input, shape index: {}]   ;;  %s5055_s2 = inlined_call_operand.hbm [shape: f32[1,128], index: 2, kind: input, shape index: {}]   ;;  %s5056_s3 = inlined_call_operand.hbm [shape: bf16[512,128], index: 3, kind: output, shape index: {}]  }
   0x1   :  { %10 = vsyncpa [#allocation3 + $0x1], 0 }
   0x2   :  { %11 = vsyncpa [#allocation6], 0 }
   0x3   :  { %12 = vsyncpa [#allocation4], 0 }
   0x4   :  { %14 = vsyncpa [#allocation4 + $0x1], 0  ;;  %s4276_s12 = smov 0   ;;  %s4278_s13 = smov 0  }
   0x5   :  { %s4280_s14 = smov 0   ;;  %s4282_s15 = smov 0  }
   0x6 LB: > { %s4297_s16 = sadd.s32 4294967295, %s4244_s15   ;;  %s2802_s17 = sadd.s32 4294967294, %s4244_s15   ;;  %s4244_s15 = sphi %s4282_s15, %s5076_s15   ;;  %s4240_s14 = sphi %s4280_s14, %s5075_s14   ;;  %s4236_s13 = sphi %s4278_s13, %s5074_s13   ;;  %s4232_s12 = sphi %s4276_s12, %s5073_s12  }
   0x7   : > { %p40_p0 = scmp.ne.s32.totalorder %s4236_s13, %s4232_s12  ;;  %p5057_p1 = scmp.eq.s32.totalorder %s4297_s16, 0 }
   0x8   : > { %p112_p3 = scmp.eq.s32.totalorder %s2802_s17, 1  ;;  %p2803_p5 = scmp.ge.s32.totalorder %s4244_s15, 1 }
   0x9   : > { %p4306_p4 = por %p5057_p1, %p40_p0  ;;  %p119_p7 = scmp.lt.s32.totalorder %s4244_s15, 3 }
   0xa   : > { %p4311_p6 = por %p112_p3, %p40_p0  ;;  %s4246_s21 = smov [#allocation5]  }
   0xb   : > { %s5060_s18 = scalar_select %p4306_p4, 1, 0 }
   0xc   : > { %s5061_s19 = scalar_select %p4311_p6, 1, 0 }
   0xd   : > { %p4316_p8 = pnand %p2803_p5, %p119_p7  ;;  %s131_s22 = sshll.u32 %s4246_s21, 4  ;;  %s4320_s22 = int_to_ptr.vmem [resolvable:$true] %s131_s22 }
   0xe   : > { %s4247_s24 = smov [#allocation7]   ;;  %s4088_s28 = scalar_lea.hbm %s5054_s1, 9216 }
   0xf   : > { %p3747_p9 = pneg %p4316_p8  ;;  %s145_s25 = sshll.u32 %s4247_s24, 4  ;;  %s4331_s25 = int_to_ptr.vmem [resolvable:$true] %s145_s25 }
  0x10   : > { %p4089_p12 = scmp.ne.s32.totalorder %s5054_s1, %s4088_s28  ;;  %p4095_p5 = scmp.lt.u32.totalorder %s4088_s28, %s5054_s1 }
  0x11   : > { %p4327_p11 = pnand %p3747_p9, %p5057_p1 }
  0x13   : > { %p4090_p13 = pneg %p4327_p11 }
  0x15   : > { %p4091_p0 = pnand %p4090_p13, %p4089_p12 }
  0x17   : > { %p4092_p3 = pneg %p4091_p0 }
  0x19   : > { %p4097_p7 = pnand %p4095_p5, %p4092_p3 }
  0x1b   : > { %4100 = shalt.err (!%p4097_p7)
}
  0x1c   : > { %s4101_s6 = scalar_lea.vmem %s4320_s22, 9216  ;;  %p4109_p2 = scmp.lt.s32.totalorder %s4320_s22, %s4320_s22 }
  0x1d   : > { %p4102_p9 = scmp.ne.s32.totalorder %s4320_s22, %s4101_s6  ;;  %p4110_p12 = scmp.lt.s32.totalorder %s4101_s6, %s4101_s6 }
  0x1f   : > { %p4104_p10 = pnand %p4102_p9, %p4090_p13  ;;  %p4111_p0 = por %p4110_p12, %p4109_p2 }
  0x21   : > { %p4105_p1 = pneg %p4104_p10 }
  0x23   : > { %p4112_p6 = pnand %p4111_p0, %p4105_p1 }
  0x25   : > { %4115 = shalt.err (!%p4112_p6)
}
  0x26   : > { %s4248_s7 = smov 64   ;;  %s4249_s8 = smov 4  }
  0x27   : > { %3750 = dma.hbm_to_vmem [thread:$0]  (!%p4327_p11), %s5054_s1, 9216, %s4320_s22, [#allocation6], %s4248_s7, %s4248_s7, %s4249_s8  }
  0x28   : > { %s4116_s21 = scalar_lea.hbm %s5055_s2, 16 }
  0x29   : > { %p4117_p2 = scmp.ne.s32.totalorder %s5055_s2, %s4116_s21  ;;  %p4123_p10 = scmp.lt.u32.totalorder %s4116_s21, %s5055_s2 }
  0x2b   : > { %p4119_p1 = pnand %p4117_p2, %p4090_p13 }
  0x2d   : > { %p4120_p6 = pneg %p4119_p1 }
  0x2f   : > { %p4125_p3 = pnand %p4123_p10, %p4120_p6 }
  0x31   : > { %4128 = shalt.err (!%p4125_p3)
}
  0x32   : > { %s4129_s22 = scalar_lea.vmem %s4331_s25, 16  ;;  %s4136_s29 = scalar_lea.vmem %s4331_s25, 32 }
  0x33   : > { %p4130_p5 = scmp.ne.s32.totalorder %s4331_s25, %s4129_s22  ;;  %p4137_p12 = scmp.lt.s32.totalorder %s4331_s25, %s4331_s25 }
  0x34   : > { %p4138_p0 = scmp.lt.s32.totalorder %s4136_s29, %s4129_s22 }
  0x35   : > { %p4132_p7 = pnand %p4130_p5, %p4090_p13 }
  0x36   : > { %p4139_p2 = por %p4138_p0, %p4137_p12 }
  0x37   : > { %p4133_p9 = pneg %p4132_p7 }
  0x39   : > { %p4140_p1 = pnand %p4139_p2, %p4133_p9 }
  0x3b   : > { %4143 = shalt.err (!%p4140_p1)
}
  0x3c   : > { %3753 = dma.hbm_to_vmem [thread:$0]  (!%p4327_p11), %s5055_s2, 16, %s4331_s25, [#allocation6]  }
  0x3d   : > { %s4387_s5 = sadd.s32 1, %s4244_s15   ;;  %s27_s23 = sadd.s32 1, %s4240_s14 }
  0x3e   : > { %s24_s6 = ssub.s32 %s4244_s15, %s4387_s5  ;;  %p34_p13 = scmp.ne.s32.totalorder %s4240_s14, %s4236_s13 }
  0x3f   : > { %p25_p6 = scmp.eq.s32.totalorder %s24_s6, 0  ;;  %p35_p10 = scmp.eq.s32.totalorder %s4244_s15, 0 }
  0x40   : > { %p5064_p3 = scmp.eq.s32.totalorder %s4297_s16, 1  ;;  %p3764_p7 = scmp.lt.s32.totalorder %s4244_s15, 2 }
  0x41   : > { %s4403_s8 = scalar_select %p25_p6, %s4240_s14, %s27_s23  }
  0x42   : > { %p4397_p5 = por %p5064_p3, %p34_p13  ;;  %p36_p9 = por %p35_p10, %p34_p13 }
  0x43   : > { %s156_s9 = sand.u32 1, %s4240_s14   ;;  %s3733_s25 = smul.u32 18432, %s4244_s15 }
  0x44   : > { %s5065_s7 = scalar_select %p4397_p5, 1, 0 }
  0x45   : > { %s3732_s10 = smul.u32 1152, %s156_s9  ;;  %p4407_p11 = pnand %p3764_p7, %p36_p9 }
  0x46   : > { %s4414_s24 = scalar_lea.hbm %s5053_s0, %s3733_s25  ;;  %s4418_s28 = scalar_lea.sflag [#allocation3], %s156_s9 }
  0x47   : > { %s160_s26 = scalar_lea.vmem [#allocation2], %s3732_s10  ;;  %s4144_s22 = scalar_lea.hbm %s4414_s24, 18432 }
  0x48   : > { %s168_s27 = sshll.u32 %s160_s26, 4  ;;  %p4145_p12 = scmp.ne.s32.totalorder %s4414_s24, %s4144_s22  ;;  %s4416_s27 = int_to_ptr.vmem [resolvable:$true] %s168_s27 }
  0x49   : > { %p4146_p0 = pneg %p4407_p11  ;;  %s4149_s4 = scalar_lea.hbm %s5053_s0, 36864 }
  0x4a   : > { %p4150_p13 = scmp.lt.u32.totalorder %s4414_s24, %s5053_s0  ;;  %p4151_p6 = scmp.lt.u32.totalorder %s4149_s4, %s4144_s22 }
  0x4b   : > { %p4147_p2 = pnand %p4146_p0, %p4145_p12  ;;  %p4153_p3 = scmp.lt.u32.totalorder %s4144_s22, %s4414_s24 }
  0x4c   : > { %p4152_p10 = por %p4151_p6, %p4150_p13 }
  0x4d   : > { %p4148_p1 = pneg %p4147_p2 }
  0x4e   : > { %p4154_p7 = por %p4153_p3, %p4152_p10 }
  0x50   : > { %p4155_p9 = pnand %p4154_p7, %p4148_p1 }
  0x52   : > { %4158 = shalt.err (!%p4155_p9)
}
  0x53   : > { %s4159_s9 = scalar_lea.vmem %s4416_s27, 18432  ;;  %s4250_s10 = smov [#allocation2]  }
  0x54   : > { %p4160_p12 = scmp.ne.s32.totalorder %s4416_s27, %s4159_s9  ;;  %s4164_s25 = sshll.u32 %s4250_s10, 4  ;;  %s4165_s25 = int_to_ptr.vmem [resolvable:$false] %s4164_s25 }
  0x55   : > { %s4166_s17 = scalar_lea.vmem %s4165_s25, 36864  ;;  %p4167_p4 = scmp.lt.s32.totalorder %s4416_s27, %s4165_s25 }
  0x56   : > { %p4162_p2 = pnand %p4160_p12, %p4146_p0  ;;  %p4168_p13 = scmp.lt.s32.totalorder %s4166_s17, %s4159_s9 }
  0x58   : > { %p4163_p5 = pneg %p4162_p2  ;;  %p4169_p6 = por %p4168_p13, %p4167_p4 }
  0x5a   : > { %p4170_p10 = pnand %p4169_p6, %p4163_p5 }
  0x5c   : > { %4173 = shalt.err (!%p4170_p10)
}
  0x5d   : > { %s4251_s21 = smov 576   ;;  %s4252_s26 = smov 36  }
  0x5e   : > { %3757 = dma.hbm_to_vmem [thread:$0]  (!%p4407_p11), %s4414_s24, 18432, %s4416_s27, %s4418_s28, %s4251_s21, %s4251_s21, %s4252_s26  }
  0x5f   : > { %180 = sbr.rel (%p4316_p8) target bundleno = 659 (0x293), region = 32  ;;  %s4449_s22 = sand.u32 (!%p4316_p8), 1, %s4236_s13  }
  0x60   : > { %s3734_s29 = smul.u32 (!%p4316_p8), 1152, %s4449_s22  ;;  %s183_s30 = scalar_lea.sflag (!%p4316_p8), [#allocation3], %s4449_s22 }
  0x61   : > { %p5067_p4 = scmp.ne.s32.totalorder (!%p4316_p8), %s5060_s18, 0 }
  0x62   : > { %s4453_s4 = scalar_lea.vmem (!%p4316_p8), [#allocation2], %s3734_s29 }
  0x66   : > { %4219 = dma.done.wait (%p5067_p4), %s183_s30, 18432  }
  0x67   : > { %4221 = vsyncadd (%p5067_p4), %s183_s30, 4294948864  ;;  %p5068_p5 = scmp.eq.s32.totalorder %s4297_s16, 0 }
  0x69   : > { %4223 = dma.done.wait (%p5068_p5), [#allocation6], 9232   ;;  %p5069_p8 = pmov %p5068_p5 }
  0x6a   : > { %v3808_v0 = vld [vmem:[#allocation5 + $0x40] sm:$0xff]   ;;  %v3810_v2 = vld [vmem:[#allocation5 + $0x48] sm:$0xff]   ;;  %v3812_v4 = vld [vmem:[#allocation5 + $0x50] sm:$0xff]   ;;  %s2813_s18 = sshll.u32 %s4449_s22, 7  ;;  %s3100_s11 = sshll.u32 %s4297_s16, 11 }
  0x6b   : > { %4225 = vsyncadd (%p5069_p8), [#allocation6], 4294958064  ;;  %v3809_v1 = vld [vmem:[#allocation5] sm:$0xff]   ;;  %3196 = vmatprep.subr.bf16.mxu0 %v3808_v0  ;;  %3716 = vmatprep.subr.bf16.mxu1 %v3808_v0  ;;  %v3811_v3 = vld [vmem:[#allocation5 + $0x8] sm:$0xff]   ;;  %s4950_s20 = scalar_lea.vmem [#allocation8], %s2813_s18  ;;  %s5006_s23 = scalar_lea.hbm %s5056_s3, %s3100_s11 }
  0x6c   : > { %3197 = vmatpush3.bf16.msra.mxu0 %v3809_v1  ;;  %3724 = vmatpush3.bf16.msra.mxu1 %v3809_v1  ;;  %v3813_v5 = vld [vmem:[#allocation5 + $0x10] sm:$0xff]   ;;  %v3814_v6 = vld [vmem:[#allocation5 + $0x58] sm:$0xff]   ;;  %v3816_v8 = vld [vmem:[#allocation5 + $0x60] sm:$0xff]   ;;  %s2710_s24 = sshll.u32 %s4950_s20, 4  ;;  %s2697_s6 = scalar_lea.sflag [#allocation4], %s4449_s22  ;;  %s5008_s24 = int_to_ptr.vmem [resolvable:$true] %s2710_s24 }
  0x6d   : > { %3198 = vmatprep.subr.bf16.mxu0 %v3810_v2  ;;  %3717 = vmatprep.subr.bf16.mxu1 %v3810_v2  ;;  %v3815_v7 = vld [vmem:[#allocation5 + $0x18] sm:$0xff]   ;;  %v3817_v9 = vld [vmem:[#allocation5 + $0x20] sm:$0xff]   ;;  %v3818_v10 = vld [vmem:[#allocation5 + $0x68] sm:$0xff]   ;;  %s4174_s9 = scalar_lea.vmem %s5008_s24, 2048  ;;  %p5070_p0 = scmp.ne.s32.totalorder %s5065_s7, 0 }
  0x6e   : > { %v3826_v11 = vld [vmem:[%s4453_s4 + $0x4] ss:$36 sps:$4 sm:$0xff]   ;;  %v3820_v14 = vld [vmem:[#allocation5 + $0x70] sm:$0xff]   ;;  %v3822_v16 = vld [vmem:[#allocation5 + $0x78] sm:$0xff]   ;;  %p4175_p11 = scmp.ne.s32.totalorder %s5008_s24, %s4174_s9  ;;  %s4253_s16 = smov [#allocation8]  }
  0x6f   : > { %v3829_v12 = vld [vmem:[%s4453_s4 + $0x364] ss:$36 sps:$4 sm:$0xff]   ;;  %1731 = vmatprep.mubr.bf16.mxu0 %v3826_v11  ;;  %v3821_v15 = vld [vmem:[#allocation5 + $0x30] sm:$0xff]   ;;  %v3823_v17 = vld [vmem:[#allocation5 + $0x38] sm:$0xff]   ;;  %s4178_s10 = sshll.u32 %s4253_s16, 4  ;;  %s4179_s10 = int_to_ptr.vmem [resolvable:$false] %s4178_s10 }
  0x70   : > { %3199 = vmatpush3.bf16.msra.mxu0 %v3811_v3  ;;  %3725 = vmatpush3.bf16.msra.mxu1 %v3811_v3  ;;  %v3819_v13 = vld [vmem:[#allocation5 + $0x28] sm:$0xff]   ;;  %v3830_v18 = vld [vmem:[#allocation5 + $0xc0] sm:$0xff]   ;;  %v3842_v31 = vld [vmem:[#allocation5 + $0xd0] sm:$0xff]   ;;  %p4176_p1 = pnand %p4175_p11, %p5070_p0  ;;  %s4180_s25 = scalar_lea.vmem %s4179_s10, 4096 }
  0x71   : > { %3200 = vmatprep.subr.bf16.mxu0 %v3812_v4  ;;  %3718 = vmatprep.subr.bf16.mxu1 %v3812_v4  ;;  %v3824_v19 = vld [vmem:[%s4453_s4] ss:$36 sps:$4 sm:$0xff]   ;;  %v3832_v23 = vld [vmem:[#allocation5 + $0xc8] sm:$0xff]   ;;  %v3843_v32 = vld [vmem:[#allocation5 + $0x90] sm:$0xff]   ;;  %p4181_p7 = scmp.lt.s32.totalorder %s5008_s24, %s4179_s10  ;;  %p4182_p9 = scmp.lt.s32.totalorder %s4180_s25, %s4174_s9 }
  0x72   : > { %1827 = vmatprep.mubr.bf16.mxu1 %v3829_v12  ;;  %v3827_v20 = vld [vmem:[%s4453_s4 + $0x360] ss:$36 sps:$4 sm:$0xff]   ;;  %v3836_v25 = vld [vmem:[%s4453_s4 + $0x4c] ss:$36 sps:$4 sm:$0xff]   ;;  %v3844_v34 = vld [vmem:[#allocation5 + $0xd8] sm:$0xff]   ;;  %p4177_p3 = pneg %p4176_p1 }
  0x73   : > { %v3833_v21 = vld [vmem:[#allocation5 + $0x140] sm:$0xff]   ;;  %v3838_v26 = vld [vmem:[%s4453_s4 + $0x3ac] ss:$36 sps:$4 sm:$0xff]   ;;  %v3846_v35 = vld [vmem:[%s4453_s4 + $0x94] ss:$36 sps:$4 sm:$0xff]   ;;  %p4183_p12 = por %p4182_p9, %p4181_p7 }
  0x74   : > { %3201 = vmatpush3.bf16.msra.mxu0 %v3813_v5  ;;  %3726 = vmatpush3.bf16.msra.mxu1 %v3813_v5  ;;  %v3831_v22 = vld [vmem:[#allocation5 + $0x80] sm:$0xff]   ;;  %v3834_v27 = vld [vmem:[#allocation5 + $0x88] sm:$0xff]   ;;  %v3848_v36 = vld [vmem:[%s4453_s4 + $0x3f4] ss:$36 sps:$4 sm:$0xff]  }
  0x75   : > { %3202 = vmatprep.subr.bf16.mxu0 %v3814_v6  ;;  %3719 = vmatprep.subr.bf16.mxu1 %v3814_v6  ;;  %v3835_v24 = vld [vmem:[#allocation5 + $0x100] sm:$0xff]   ;;  %v3853_v28 = vld [vmem:[#allocation5 + $0x148] sm:$0xff]   ;;  %v3845_v37 = vld [vmem:[#allocation5 + $0x98] sm:$0xff]   ;;  %p4184_p2 = pnand %p4183_p12, %p4177_p3 }
  0x76   : > { %v3840_v29 = vld [vmem:[%s4453_s4 + $0x48] ss:$36 sps:$4 sm:$0xff]   ;;  %v3850_v38 = vld [vmem:[%s4453_s4 + $0x90] ss:$36 sps:$4 sm:$0xff]   ;;  %v3852_v40 = vld [vmem:[#allocation5 + $0xe0] sm:$0xff]  }
  0x77   : > { %v3841_v30 = vld [vmem:[%s4453_s4 + $0x3a8] ss:$36 sps:$4 sm:$0xff]   ;;  %v3851_v39 = vld [vmem:[%s4453_s4 + $0x3f0] ss:$36 sps:$4 sm:$0xff]   ;;  %v3854_v41 = vld [vmem:[#allocation5 + $0xa0] sm:$0xff]  }
  0x78   : > { %3203 = vmatpush3.bf16.msra.mxu0 %v3815_v7  ;;  %3727 = vmatpush3.bf16.msra.mxu1 %v3815_v7  ;;  %v3855_v33 = vld [vmem:[#allocation5 + $0x108] sm:$0xff]   ;;  %v3867_v43 = vld [vmem:[#allocation5 + $0x150] sm:$0xff]   ;;  %v3858_v44 = vld [vmem:[%s4453_s4 + $0xdc] ss:$36 sps:$4 sm:$0xff]  }
  0x79   : > { %3204 = vmatprep.subr.bf16.mxu0 %v3816_v8  ;;  %3720 = vmatprep.subr.bf16.mxu1 %v3816_v8  ;;  %v3856_v42 = vld [vmem:[#allocation5 + $0xe8] sm:$0xff]   ;;  %v3860_v45 = vld [vmem:[%s4453_s4 + $0x43c] ss:$36 sps:$4 sm:$0xff]   ;;  %v3869_v46 = vld [vmem:[#allocation5 + $0x110] sm:$0xff]  }
  0x7a   : > { %v3857_v47 = vld [vmem:[#allocation5 + $0xa8] sm:$0xff]   ;;  %v3864_v48 = vld [vmem:[#allocation5 + $0xf0] sm:$0xff]   ;;  %v3862_v49 = vld [vmem:[%s4453_s4 + $0xd8] ss:$36 sps:$4 sm:$0xff]  }
  0x7b   : > { %v3863_v50 = vld [vmem:[%s4453_s4 + $0x438] ss:$36 sps:$4 sm:$0xff]   ;;  %v3865_v51 = vld [vmem:[#allocation5 + $0xb0] sm:$0xff]   ;;  %v3870_v53 = vld [vmem:[%s4453_s4 + $0x124] ss:$36 sps:$4 sm:$0xff]  }
  0x7c   : > { %3205 = vmatpush3.bf16.msra.mxu0 %v3817_v9  ;;  %3728 = vmatpush3.bf16.msra.mxu1 %v3817_v9  ;;  %v3866_v52 = vld [vmem:[#allocation5 + $0xf8] sm:$0xff]   ;;  %v3874_v54 = vld [vmem:[%s4453_s4 + $0xc] ss:$36 sps:$4 sm:$0xff]   ;;  %v3875_v59 = vld [vmem:[%s4453_s4 + $0x120] ss:$36 sps:$4 sm:$0xff]  }
  0x7d   : > { %3206 = vmatprep.subr.bf16.mxu0 %v3818_v10  ;;  %3721 = vmatprep.subr.bf16.mxu1 %v3818_v10  ;;  %v3884_v55 = vld [vmem:[#allocation5 + $0x158] sm:$0xff]   ;;  %v3872_v58 = vld [vmem:[%s4453_s4 + $0x8] ss:$36 sps:$4 sm:$0xff]   ;;  %v3876_v60 = vld [vmem:[#allocation5 + $0x1c0] sm:$0xff]  }
  0x7e   : > { %v3885_v56 = vld [vmem:[#allocation5 + $0x118] sm:$0xff]   ;;  %v3877_v61 = vld [vmem:[#allocation5 + $0x180] sm:$0xff]   ;;  %v3878_v62 = vld [vmem:[%s4453_s4 + $0x16c] ss:$36 sps:$4 sm:$0xff]  }
  0x7f   : > { %v3868_v57 = vld [vmem:[#allocation5 + $0xb8] sm:$0xff]   ;;  %v3894_v0 = vld [vmem:[#allocation5 + $0x160] sm:$0xff]   ;;  %v3892_v1 = vld [vmem:[#allocation5 + $0x1c8] sm:$0xff]  }
  0x80   : > { %3207 = vmatpush3.bf16.msra.mxu0 %v3819_v13  ;;  %3729 = vmatpush3.bf16.msra.mxu1 %v3819_v13  ;;  %v3880_v63 = vld [vmem:[%s4453_s4 + $0x54] ss:$36 sps:$4 sm:$0xff]   ;;  %v3895_v2 = vld [vmem:[#allocation5 + $0x120] sm:$0xff]   ;;  %v3893_v3 = vld [vmem:[#allocation5 + $0x188] sm:$0xff]  }
  0x81   : > { %3208 = vmatprep.subr.bf16.mxu0 %v3820_v14  ;;  %3722 = vmatprep.subr.bf16.mxu1 %v3820_v14  ;;  %v3882_v4 = vld [vmem:[%s4453_s4 + $0x168] ss:$36 sps:$4 sm:$0xff]   ;;  %v3883_v5 = vld [vmem:[%s4453_s4 + $0x50] ss:$36 sps:$4 sm:$0xff]   ;;  %v3888_v7 = vld [vmem:[%s4453_s4 + $0x9c] ss:$36 sps:$4 sm:$0xff]  }
  0x82   : > { %v3886_v6 = vld [vmem:[%s4453_s4 + $0x1b4] ss:$36 sps:$4 sm:$0xff]   ;;  %v3908_v8 = vld [vmem:[#allocation5 + $0x168] sm:$0xff]   ;;  %v3896_v14 = vld [vmem:[%s4453_s4 + $0x1fc] ss:$36 sps:$4 sm:$0xff]  }
  0x83   : > { %v3909_v9 = vld [vmem:[#allocation5 + $0x1d0] sm:$0xff]   ;;  %v3910_v10 = vld [vmem:[#allocation5 + $0x128] sm:$0xff]   ;;  %v3891_v13 = vld [vmem:[%s4453_s4 + $0x98] ss:$36 sps:$4 sm:$0xff]  }
  0x84   : > { %3209 = vmatpush3.bf16.msra.mxu0 %v3821_v15  ;;  %3730 = vmatpush3.bf16.msra.mxu1 %v3821_v15  ;;  %v3911_v11 = vld [vmem:[#allocation5 + $0x190] sm:$0xff]  }
  0x85   : > { %3210 = vmatprep.subr.bf16.mxu0 %v3822_v16  ;;  %3723 = vmatprep.subr.bf16.mxu1 %v3822_v16  ;;  %v3890_v12 = vld [vmem:[%s4453_s4 + $0x1b0] ss:$36 sps:$4 sm:$0xff]  }
  0x86   : > { %v3918_v15 = vld [vmem:[#allocation5 + $0x170] sm:$0xff]  }
  0x87   : > { %v3919_v16 = vld [vmem:[#allocation5 + $0x130] sm:$0xff]  }
  0x88   : > { %3211 = vmatpush3.bf16.msra.mxu0 %v3823_v17  ;;  %3731 = vmatpush3.bf16.msra.mxu1 %v3823_v17  ;;  %v3898_v17 = vld [vmem:[%s4453_s4 + $0xe4] ss:$36 sps:$4 sm:$0xff]  }
  0x89   : > { %3308 = vmatprep.subr.bf16.mxu1 %v3830_v18  ;;  %3420 = vmatprep.subr.bf16.mxu0 %v3833_v21  ;;  %v3926_v18 = vld [vmem:[#allocation5 + $0x1d8] sm:$0xff]   ;;  %v3901_v21 = vld [vmem:[%s4453_s4 + $0xe0] ss:$36 sps:$4 sm:$0xff]  }
  0x8b   : > { %1732 = vmatmul.mubr.bf16.vlgmr.msra.gmra.mrb[0].mxu0 %v3824_v19  ;;  %1828 = vmatmul.mubr.bf16.vlgmr.msra.gmra.mrb[0].mxu1 %v3827_v20  ;;  %v3927_v19 = vld [vmem:[#allocation5 + $0x198] sm:$0xff]  }
  0x8c   : > { %3309 = vmatpush3.bf16.msra.mxu1 %v3831_v22  ;;  %3421 = vmatpush3.bf16.msra.mxu0 %v3835_v24  ;;  %v3900_v20 = vld [vmem:[%s4453_s4 + $0x1f8] ss:$36 sps:$4 sm:$0xff]   ;;  %v3902_v22 = vld [vmem:[%s4453_s4 + $0x244] ss:$36 sps:$4 sm:$0xff]  }
  0x8d   : > { %3310 = vmatprep.subr.bf16.mxu1 %v3832_v23  ;;  %1739 = vmatprep.mubr.bf16.mxu0 %v3836_v25  ;;  %v3904_v23 = vld [vmem:[%s4453_s4 + $0x12c] ss:$36 sps:$4 sm:$0xff]   ;;  %v3934_v24 = vld [vmem:[#allocation5 + $0x178] sm:$0xff]  }
  0x8e   : > { %1835 = vmatprep.mubr.bf16.mxu1 %v3838_v26  ;;  %3422 = vmatprep.subr.bf16.mxu0 %v3853_v28  ;;  %v3935_v25 = vld [vmem:[#allocation5 + $0x138] sm:$0xff]   ;;  %v3942_v26 = vld [vmem:[#allocation5 + $0x1e0] sm:$0xff]  }
  0x8f   : > { %v3943_v28 = vld [vmem:[#allocation5 + $0x1a0] sm:$0xff]  }
  0x90   : > { %3311 = vmatpush3.bf16.msra.mxu1 %v3834_v27  ;;  %3423 = vmatpush3.bf16.msra.mxu0 %v3855_v33  ;;  %v3906_v27 = vld [vmem:[%s4453_s4 + $0x240] ss:$36 sps:$4 sm:$0xff]   ;;  %v3957_v33 = vld [vmem:[#allocation5 + $0x1e8] sm:$0xff]  }
  0x91   : > { %3312 = vmatprep.subr.bf16.mxu1 %v3842_v31  ;;  %3424 = vmatprep.subr.bf16.mxu0 %v3867_v43  ;;  %v3912_v31 = vld [vmem:[%s4453_s4 + $0x28c] ss:$36 sps:$4 sm:$0xff]   ;;  %v3928_v43 = vld [vmem:[%s4453_s4 + $0x31c] ss:$36 sps:$4 sm:$0xff]  }
  0x93   : > { %1740 = vmatmul.mubr.bf16.gmra.mrb[4].mxu0 %v3840_v29  ;;  %1836 = vmatmul.mubr.bf16.gmra.mrb[4].mxu1 %v3841_v30  ;;  %v3944_v29 = vld [vmem:[#allocation5 + $0x200] sm:$0xff]   ;;  %v3907_v30 = vld [vmem:[%s4453_s4 + $0x128] ss:$36 sps:$4 sm:$0xff]  }
  0x94   : > { %3313 = vmatpush3.bf16.msra.mxu1 %v3843_v32  ;;  %1747 = vmatprep.mubr.bf16.mxu0 %v3846_v35  ;;  %v3914_v32 = vld [vmem:[%s4453_s4 + $0x174] ss:$36 sps:$4 sm:$0xff]   ;;  %v3958_v35 = vld [vmem:[#allocation5 + $0x1a8] sm:$0xff]  }
  0x95   : > { %3314 = vmatprep.subr.bf16.mxu1 %v3844_v34  ;;  %1843 = vmatprep.mubr.bf16.mxu1 %v3848_v36  ;;  %v3916_v34 = vld [vmem:[%s4453_s4 + $0x288] ss:$36 sps:$4 sm:$0xff]   ;;  %v3917_v36 = vld [vmem:[%s4453_s4 + $0x170] ss:$36 sps:$4 sm:$0xff]  }
  0x96   : > { %3425 = vmatpush3.bf16.msra.mxu0 %v3869_v46  ;;  %v3933_v46 = vld [vmem:[%s4453_s4 + $0x200] ss:$36 sps:$4 sm:$0xff]  }
  0x97   : > { %3426 = vmatprep.subr.bf16.mxu0 %v3884_v55  ;;  %v3959_v55 = vld [vmem:[#allocation5 + $0x208] sm:$0xff]  }
  0x98   : > { %3315 = vmatpush3.bf16.msra.mxu1 %v3845_v37  ;;  %v3920_v37 = vld [vmem:[%s4453_s4 + $0x2d4] ss:$36 sps:$4 sm:$0xff]  }
  0x99   : > { %3316 = vmatprep.subr.bf16.mxu1 %v3852_v40  ;;  %v3925_v40 = vld [vmem:[%s4453_s4 + $0x1b8] ss:$36 sps:$4 sm:$0xff]  }
  0x9a   : > { %3427 = vmatpush3.bf16.msra.mxu0 %v3885_v56  ;;  %v3974_v56 = vld [vmem:[#allocation5 + $0x210] sm:$0xff]  }
  0x9b   : > { %1748 = vmatmul.mubr.bf16.gmra.mrb[8].mxu0 %v3850_v38  ;;  %1844 = vmatmul.mubr.bf16.gmra.mrb[8].mxu1 %v3851_v39  ;;  %v3922_v38 = vld [vmem:[%s4453_s4 + $0x1bc] ss:$36 sps:$4 sm:$0xff]   ;;  %v3924_v39 = vld [vmem:[%s4453_s4 + $0x2d0] ss:$36 sps:$4 sm:$0xff]  }
  0x9c   : > { %3317 = vmatpush3.bf16.msra.mxu1 %v3854_v41  ;;  %1755 = vmatprep.mubr.bf16.mxu0 %v3858_v44  ;;  %v3972_v41 = vld [vmem:[#allocation5 + $0x1f0] sm:$0xff]   ;;  %v3930_v44 = vld [vmem:[%s4453_s4 + $0x204] ss:$36 sps:$4 sm:$0xff]  }
  0x9d   : > { %3318 = vmatprep.subr.bf16.mxu1 %v3856_v42  ;;  %1851 = vmatprep.mubr.bf16.mxu1 %v3860_v45  ;;  %v3973_v42 = vld [vmem:[#allocation5 + $0x1b0] sm:$0xff]   ;;  %v3932_v45 = vld [vmem:[%s4453_s4 + $0x318] ss:$36 sps:$4 sm:$0xff]  }
  0x9e   : > { %3428 = vmatprep.subr.bf16.mxu0 %v3894_v0  ;;  %v3956_v0 = vld [vmem:[%s4453_s4 + $0xa0] ss:$36 sps:$4 sm:$0xff]  }
  0x9f   : > { %3429 = vmatpush3.bf16.msra.mxu0 %v3895_v2  ;;  %v3962_v2 = vld [vmem:[%s4453_s4 + $0xec] ss:$36 sps:$4 sm:$0xff]  }
  0xa0   : > { %3319 = vmatpush3.bf16.msra.mxu1 %v3857_v47  ;;  %3430 = vmatprep.subr.bf16.mxu0 %v3908_v8  ;;  %v3987_v47 = vld [vmem:[#allocation5 + $0x1f8] sm:$0xff]  }
  0xa1   : > { %3320 = vmatprep.subr.bf16.mxu1 %v3864_v48  ;;  %v3988_v48 = vld [vmem:[#allocation5 + $0x1b8] sm:$0xff]  }
  0xa2   : > { %v3968_v8 = vld [vmem:[%s4453_s4 + $0x134] ss:$36 sps:$4 sm:$0xff]  }
  0xa3   : > { %1756 = vmatmul.mubr.bf16.gmra.mrb[12].mxu0 %v3862_v49  ;;  %1852 = vmatmul.mubr.bf16.gmra.mrb[12].mxu1 %v3863_v50  ;;  %v3936_v49 = vld [vmem:[%s4453_s4 + $0x24c] ss:$36 sps:$4 sm:$0xff]   ;;  %v3940_v50 = vld [vmem:[%s4453_s4 + $0x14] ss:$36 sps:$4 sm:$0xff]  }
  0xa4   : > { %3321 = vmatpush3.bf16.msra.mxu1 %v3865_v51  ;;  %1763 = vmatprep.mubr.bf16.mxu0 %v3870_v53  ;;  %v3938_v51 = vld [vmem:[%s4453_s4 + $0x10] ss:$36 sps:$4 sm:$0xff]  }
  0xa5   : > { %3322 = vmatprep.subr.bf16.mxu1 %v3866_v52  ;;  %1892 = vmatprep.mubr.bf16.mxu1 %v3874_v54  ;;  %v3941_v52 = vld [vmem:[%s4453_s4 + $0x248] ss:$36 sps:$4 sm:$0xff]   ;;  %v3945_v53 = vld [vmem:[%s4453_s4 + $0x294] ss:$36 sps:$4 sm:$0xff]   ;;  %v3947_v54 = vld [vmem:[%s4453_s4 + $0x5c] ss:$36 sps:$4 sm:$0xff]  }
  0xa6   : > { %3431 = vmatpush3.bf16.msra.mxu0 %v3910_v10  ;;  %v3970_v10 = vld [vmem:[%s4453_s4 + $0x368] ss:$36 sps:$4 sm:$0xff]  }
  0xa7   : > { %3432 = vmatprep.subr.bf16.mxu0 %v3918_v15  ;;  %v3980_v15 = vld [vmem:[%s4453_s4 + $0x178] ss:$36 sps:$4 sm:$0xff]  }
  0xa8   : > { %3323 = vmatpush3.bf16.msra.mxu1 %v3868_v57  ;;  %v3949_v57 = vld [vmem:[%s4453_s4 + $0x290] ss:$36 sps:$4 sm:$0xff]  }
  0xa9   : > { %3532 = vmatprep.subr.bf16.mxu1 %v3876_v60  ;;  %v3953_v60 = vld [vmem:[%s4453_s4 + $0xa4] ss:$36 sps:$4 sm:$0xff]  }
  0xaa   : > { %3433 = vmatpush3.bf16.msra.mxu0 %v3919_v16  ;;  %v3981_v16 = vld [vmem:[%s4453_s4 + $0x3fc] ss:$36 sps:$4 sm:$0xff]  }
  0xab   : > { %1764 = vmatmul.mubr.bf16.gmra.mrb[16].mxu0 %v3875_v59  ;;  %1893 = vmatmul.mubr.bf16.vlgmr.msra.gmra.mrb[16].mxu1 %v3872_v58  ;;  %v3950_v58 = vld [vmem:[%s4453_s4 + $0x58] ss:$36 sps:$4 sm:$0xff]  }
  0xac   : > { %3533 = vmatpush3.bf16.msra.mxu1 %v3877_v61  ;;  %1771 = vmatprep.mubr.bf16.mxu0 %v3878_v62  ;;  %v3951_v59 = vld [vmem:[%s4453_s4 + $0x2dc] ss:$36 sps:$4 sm:$0xff]  }
  0xad   : > { %1900 = vmatprep.mubr.bf16.mxu1 %v3880_v63  ;;  %3534 = vmatprep.subr.bf16.mxu1 %v3892_v1  ;;  %v3989_v61 = vld [vmem:[#allocation5 + $0x218] sm:$0xff]   ;;  %v4002_v62 = vld [vmem:[#allocation5 + $0x220] sm:$0xff]  }
  0xae   : > { %3434 = vmatprep.subr.bf16.mxu0 %v3934_v24  ;;  %v3955_v63 = vld [vmem:[%s4453_s4 + $0x2d8] ss:$36 sps:$4 sm:$0xff]   ;;  %v3960_v1 = vld [vmem:[%s4453_s4 + $0x324] ss:$36 sps:$4 sm:$0xff]  }
  0xaf   : > { %3435 = vmatpush3.bf16.msra.mxu0 %v3935_v25  ;;  %v3996_v24 = vld [vmem:[%s4453_s4 + $0x254] ss:$36 sps:$4 sm:$0xff]   ;;  %v4000_v25 = vld [vmem:[%s4453_s4 + $0x1c] ss:$36 sps:$4 sm:$0xff]  }
  0xb0   : > { %3535 = vmatpush3.bf16.msra.mxu1 %v3893_v3  ;;  %3668 = vmatprep.subr.bf16.mxu0 %v3944_v29  ;;  %v4015_v3 = vld [vmem:[#allocation5 + $0x228] sm:$0xff]  }
  0xb1   : > { %3536 = vmatprep.subr.bf16.mxu1 %v3909_v9  ;;  %v4041_v9 = vld [vmem:[#allocation5 + $0x238] sm:$0xff]  }
  0xb3   : > { %1772 = vmatmul.mubr.bf16.gmra.mrb[20].mxu0 %v3882_v4  ;;  %1901 = vmatmul.mubr.bf16.gmra.mrb[20].mxu1 %v3883_v5  ;;  %v3964_v4 = vld [vmem:[%s4453_s4 + $0x320] ss:$36 sps:$4 sm:$0xff]   ;;  %v3965_v5 = vld [vmem:[%s4453_s4 + $0xe8] ss:$36 sps:$4 sm:$0xff]  }
  0xb4   : > { %1779 = vmatprep.mubr.bf16.mxu0 %v3886_v6  ;;  %1908 = vmatprep.mubr.bf16.mxu1 %v3888_v7  ;;  %v4028_v6 = vld [vmem:[#allocation5 + $0x230] sm:$0xff]  }
  0xb5   : > { %3537 = vmatpush3.bf16.msra.mxu1 %v3911_v11  ;;  %v3966_v7 = vld [vmem:[%s4453_s4 + $0x36c] ss:$36 sps:$4 sm:$0xff]  }
  0xb6   : > { %3538 = vmatprep.subr.bf16.mxu1 %v3926_v18  ;;  %v3971_v11 = vld [vmem:[%s4453_s4 + $0x130] ss:$36 sps:$4 sm:$0xff]   ;;  %v3985_v18 = vld [vmem:[%s4453_s4 + $0x3f8] ss:$36 sps:$4 sm:$0xff]  }
  0xb9   : > { %3539 = vmatpush3.bf16.msra.mxu1 %v3927_v19  ;;  %v3986_v19 = vld [vmem:[%s4453_s4 + $0x1c0] ss:$36 sps:$4 sm:$0xff]  }
  0xba   : > { %3540 = vmatprep.subr.bf16.mxu1 %v3942_v26  ;;  %v3998_v26 = vld [vmem:[%s4453_s4 + $0x18] ss:$36 sps:$4 sm:$0xff]  }
  0xbb   : > { %1780 = vmatmul.mubr.bf16.gmra.mrb[24].mxu0 %v3890_v12  ;;  %1909 = vmatmul.mubr.bf16.gmra.mrb[24].mxu1 %v3891_v13  ;;  %v3975_v12 = vld [vmem:[%s4453_s4 + $0x3b4] ss:$36 sps:$4 sm:$0xff]   ;;  %v3977_v13 = vld [vmem:[%s4453_s4 + $0x17c] ss:$36 sps:$4 sm:$0xff]  }
  0xbc   : > { %1787 = vmatprep.mubr.bf16.mxu0 %v3896_v14  ;;  %1916 = vmatprep.mubr.bf16.mxu1 %v3898_v17  ;;  %v3979_v14 = vld [vmem:[%s4453_s4 + $0x3b0] ss:$36 sps:$4 sm:$0xff]   ;;  %v3983_v17 = vld [vmem:[%s4453_s4 + $0x1c4] ss:$36 sps:$4 sm:$0xff]  }
  0xbd   : > { %3541 = vmatpush3.bf16.msra.mxu1 %v3943_v28  ;;  %v4003_v28 = vld [vmem:[%s4453_s4 + $0x29c] ss:$36 sps:$4 sm:$0xff]  }
  0xbe   : > { %3542 = vmatprep.subr.bf16.mxu1 %v3957_v33  ;;  %v4011_v33 = vld [vmem:[%s4453_s4 + $0xac] ss:$36 sps:$4 sm:$0xff]  }
  0xc1   : > { %3543 = vmatpush3.bf16.msra.mxu1 %v3958_v35  ;;  %v4014_v35 = vld [vmem:[%s4453_s4 + $0xa8] ss:$36 sps:$4 sm:$0xff]  }
  0xc2   : > { %3544 = vmatprep.subr.bf16.mxu1 %v3972_v41  ;;  %v4024_v41 = vld [vmem:[%s4453_s4 + $0x13c] ss:$36 sps:$4 sm:$0xff]  }
  0xc3   : > { %1788 = vmatmul.mubr.bf16.gmra.mrb[28].mxu0 %v3900_v20  ;;  %1917 = vmatmul.mubr.bf16.gmra.mrb[28].mxu1 %v3901_v21  ;;  %v3990_v20 = vld [vmem:[%s4453_s4 + $0x444] ss:$36 sps:$4 sm:$0xff]   ;;  %v3992_v21 = vld [vmem:[%s4453_s4 + $0x20c] ss:$36 sps:$4 sm:$0xff]  }
  0xc4   : > { %1795 = vmatprep.mubr.bf16.mxu0 %v3902_v22  ;;  %1924 = vmatprep.mubr.bf16.mxu1 %v3904_v23  ;;  %v3994_v22 = vld [vmem:[%s4453_s4 + $0x440] ss:$36 sps:$4 sm:$0xff]   ;;  %v3995_v23 = vld [vmem:[%s4453_s4 + $0x208] ss:$36 sps:$4 sm:$0xff]  }
  0xc5   : > { %3545 = vmatpush3.bf16.msra.mxu1 %v3973_v42  ;;  %v4026_v42 = vld [vmem:[%s4453_s4 + $0x370] ss:$36 sps:$4 sm:$0xff]  }
  0xc6   : > { %3546 = vmatprep.subr.bf16.mxu1 %v3987_v47  ;;  %v4034_v47 = vld [vmem:[%s4453_s4 + $0x180] ss:$36 sps:$4 sm:$0xff]  }
  0xc9   : > { %3547 = vmatpush3.bf16.msra.mxu1 %v3988_v48  ;;  %v4035_v48 = vld [vmem:[%s4453_s4 + $0x404] ss:$36 sps:$4 sm:$0xff]  }
  0xcb   : > { %1796 = vmatmul.mubr.bf16.gmra.mrb[32].mxu0 %v3906_v27  ;;  %1925 = vmatmul.mubr.bf16.gmra.mrb[32].mxu1 %v3907_v30  ;;  %v4001_v27 = vld [vmem:[%s4453_s4 + $0x250] ss:$36 sps:$4 sm:$0xff]   ;;  %v4007_v30 = vld [vmem:[%s4453_s4 + $0x298] ss:$36 sps:$4 sm:$0xff]  }
  0xcc   : > { %1803 = vmatprep.mubr.bf16.mxu0 %v3912_v31  ;;  %1932 = vmatprep.mubr.bf16.mxu1 %v3914_v32  ;;  %v4008_v31 = vld [vmem:[%s4453_s4 + $0x60] ss:$36 sps:$4 sm:$0xff]  }
  0xcd   : > { %v4009_v32 = vld [vmem:[%s4453_s4 + $0x2e4] ss:$36 sps:$4 sm:$0xff]  }
  0xd3   : > { %1804 = vmatmul.mubr.bf16.gmra.mrb[36].mxu0 %v3916_v34  ;;  %1933 = vmatmul.mubr.bf16.gmra.mrb[36].mxu1 %v3917_v36  ;;  %v4013_v34 = vld [vmem:[%s4453_s4 + $0x2e0] ss:$36 sps:$4 sm:$0xff]   ;;  %v4016_v36 = vld [vmem:[%s4453_s4 + $0x32c] ss:$36 sps:$4 sm:$0xff]  }
  0xd4   : > { %1811 = vmatprep.mubr.bf16.mxu0 %v3920_v37  ;;  %1940 = vmatprep.mubr.bf16.mxu1 %v3922_v38  ;;  %v4018_v37 = vld [vmem:[%s4453_s4 + $0xf4] ss:$36 sps:$4 sm:$0xff]   ;;  %v4020_v38 = vld [vmem:[%s4453_s4 + $0x328] ss:$36 sps:$4 sm:$0xff]  }
  0xdb   : > { %1812 = vmatmul.mubr.bf16.gmra.mrb[40].mxu0 %v3924_v39  ;;  %1941 = vmatmul.mubr.bf16.gmra.mrb[40].mxu1 %v3925_v40  ;;  %v4021_v39 = vld [vmem:[%s4453_s4 + $0xf0] ss:$36 sps:$4 sm:$0xff]  }
  0xdc   : > { %1819 = vmatprep.mubr.bf16.mxu0 %v3928_v43  ;;  %1948 = vmatprep.mubr.bf16.mxu1 %v3930_v44  ;;  %v4022_v40 = vld [vmem:[%s4453_s4 + $0x374] ss:$36 sps:$4 sm:$0xff]   ;;  %v4029_v44 = vld [vmem:[%s4453_s4 + $0x3bc] ss:$36 sps:$4 sm:$0xff]  }
  0xdd   : > { %v4027_v43 = vld [vmem:[%s4453_s4 + $0x138] ss:$36 sps:$4 sm:$0xff]  }
  0xe3   : > { %1820 = vmatmul.mubr.bf16.gmra.mrb[44].mxu0 %v3932_v45  ;;  %1949 = vmatmul.mubr.bf16.gmra.mrb[44].mxu1 %v3933_v46  ;;  %v4031_v45 = vld [vmem:[%s4453_s4 + $0x184] ss:$36 sps:$4 sm:$0xff]   ;;  %v4033_v46 = vld [vmem:[%s4453_s4 + $0x3b8] ss:$36 sps:$4 sm:$0xff]  }
  0xe4   : > { %1956 = vmatprep.mubr.bf16.mxu1 %v3936_v49  ;;  %2053 = vmatprep.mubr.bf16.mxu0 %v3940_v50  ;;  %v4037_v49 = vld [vmem:[%s4453_s4 + $0x1cc] ss:$36 sps:$4 sm:$0xff]   ;;  %v4039_v50 = vld [vmem:[%s4453_s4 + $0x400] ss:$36 sps:$4 sm:$0xff]  }
  0xeb   : > { %1957 = vmatmul.mubr.bf16.gmra.mrb[48].mxu1 %v3941_v52  ;;  %2054 = vmatmul.mubr.bf16.vlgmr.msra.gmra.mrb[48].mxu0 %v3938_v51  ;;  %v4040_v51 = vld [vmem:[%s4453_s4 + $0x1c8] ss:$36 sps:$4 sm:$0xff]  }
  0xec   : > { %3669 = vmatpush3.bf16.msra.mxu0 %v3944_v29  ;;  %1964 = vmatprep.mubr.bf16.mxu1 %v3945_v53  ;;  %v4005_v29 = vld [vmem:[%s4453_s4 + $0x64] ss:$36 sps:$4 sm:$0xff]   ;;  %v4042_v52 = vld [vmem:[%s4453_s4 + $0x44c] ss:$36 sps:$4 sm:$0xff]   ;;  %v4044_v53 = vld [vmem:[%s4453_s4 + $0x214] ss:$36 sps:$4 sm:$0xff]  }
  0xed   : > { %2061 = vmatprep.mubr.bf16.mxu0 %v3947_v54  ;;  %3670 = vmatprep.subr.bf16.mxu0 %v3959_v55 }
  0xf0   : > { %3671 = vmatpush3.bf16.msra.mxu0 %v3959_v55 }
  0xf1   : > { %3672 = vmatprep.subr.bf16.mxu0 %v3974_v56 }
  0xf3   : > { %1965 = vmatmul.mubr.bf16.gmra.mrb[52].mxu1 %v3949_v57  ;;  %2062 = vmatmul.mubr.bf16.gmra.mrb[52].mxu0 %v3950_v58  ;;  %v4046_v58 = vld [vmem:[%s4453_s4 + $0x448] ss:$36 sps:$4 sm:$0xff]  }
  0xf4   : > { %1972 = vmatprep.mubr.bf16.mxu1 %v3951_v59  ;;  %2069 = vmatprep.mubr.bf16.mxu0 %v3953_v60  ;;  %v4047_v59 = vld [vmem:[%s4453_s4 + $0x210] ss:$36 sps:$4 sm:$0xff]  }
  0xf5   : > { %3673 = vmatpush3.bf16.msra.mxu0 %v3974_v56 }
  0xf6   : > { %3674 = vmatprep.subr.bf16.mxu0 %v3989_v61 }
  0xf9   : > { %3675 = vmatpush3.bf16.msra.mxu0 %v3989_v61 }
  0xfa   : > { %3676 = vmatprep.subr.bf16.mxu0 %v4002_v62 }
  0xfb   : > { %1973 = vmatmul.mubr.bf16.gmra.mrb[56].mxu1 %v3955_v63  ;;  %2070 = vmatmul.mubr.bf16.gmra.mrb[56].mxu0 %v3956_v0  ;;  %v4048_v0 = vld [vmem:[%s4453_s4 + $0x25c] ss:$36 sps:$4 sm:$0xff]  }
  0xfc   : > { %1980 = vmatprep.mubr.bf16.mxu1 %v3960_v1  ;;  %2077 = vmatprep.mubr.bf16.mxu0 %v3962_v2  ;;  %v4050_v1 = vld [vmem:[%s4453_s4 + $0x20] ss:$36 sps:$4 sm:$0xff]  }
  0xfd   : > { %3677 = vmatpush3.bf16.msra.mxu0 %v4002_v62 }
  0xfe   : > { %3678 = vmatprep.subr.bf16.mxu0 %v4015_v3 }
 0x101   : > { %3679 = vmatpush3.bf16.msra.mxu0 %v4015_v3 }
 0x102   : > { %3680 = vmatprep.subr.bf16.mxu0 %v4028_v6 }
 0x103   : > { %1981 = vmatmul.mubr.bf16.gmra.mrb[60].mxu1 %v3964_v4  ;;  %2078 = vmatmul.mubr.bf16.gmra.mrb[60].mxu0 %v3965_v5 }
 0x104   : > { %1988 = vmatprep.mubr.bf16.mxu1 %v3966_v7  ;;  %2085 = vmatprep.mubr.bf16.mxu0 %v3968_v8 }
 0x105   : > { %3681 = vmatpush3.bf16.msra.mxu0 %v4028_v6 }
 0x106   : > { %3682 = vmatprep.subr.bf16.mxu0 %v4041_v9 }
 0x109   : > { %3683 = vmatpush3.bf16.msra.mxu0 %v4041_v9 }
 0x10b   : > { %1989 = vmatmul.mubr.bf16.gmra.mrb[64].mxu1 %v3970_v10  ;;  %2086 = vmatmul.mubr.bf16.gmra.mrb[64].mxu0 %v3971_v11  ;;  %v4051_v10 = vld [vmem:[%s4453_s4 + $0x258] ss:$36 sps:$4 sm:$0xff]   ;;  %v4052_v11 = vld [vmem:[%s4453_s4 + $0x68] ss:$36 sps:$4 sm:$0xff]  }
 0x10c   : > { %1996 = vmatprep.mubr.bf16.mxu1 %v3975_v12  ;;  %2093 = vmatprep.mubr.bf16.mxu0 %v3977_v13 }
 0x113   : > { %1997 = vmatmul.mubr.bf16.gmra.mrb[68].mxu1 %v3979_v14  ;;  %2094 = vmatmul.mubr.bf16.gmra.mrb[68].mxu0 %v3980_v15 }
 0x114   : > { %2004 = vmatprep.mubr.bf16.mxu1 %v3981_v16  ;;  %2101 = vmatprep.mubr.bf16.mxu0 %v3983_v17  ;;  %v4053_v16 = vld [vmem:[%s4453_s4 + $0x2a4] ss:$36 sps:$4 sm:$0xff]   ;;  %v4055_v17 = vld [vmem:[%s4453_s4 + $0xb0] ss:$36 sps:$4 sm:$0xff]  }
 0x11b   : > { %2005 = vmatmul.mubr.bf16.gmra.mrb[72].mxu1 %v3985_v18  ;;  %2102 = vmatmul.mubr.bf16.gmra.mrb[72].mxu0 %v3986_v19 }
 0x11c   : > { %2012 = vmatprep.mubr.bf16.mxu1 %v3990_v20  ;;  %2109 = vmatprep.mubr.bf16.mxu0 %v3992_v21 }
 0x123   : > { %2013 = vmatmul.mubr.bf16.gmra.mrb[76].mxu1 %v3994_v22  ;;  %2110 = vmatmul.mubr.bf16.gmra.mrb[76].mxu0 %v3995_v23 }
 0x124   : > { %2117 = vmatprep.mubr.bf16.mxu0 %v3996_v24  ;;  %2214 = vmatprep.mubr.bf16.mxu1 %v4000_v25 }
 0x12b   : > { %2118 = vmatmul.mubr.bf16.gmra.mrb[80].mxu0 %v4001_v27  ;;  %2215 = vmatmul.mubr.bf16.vlgmr.msra.gmra.mrb[80].mxu1 %v3998_v26  ;;  %v4056_v26 = vld [vmem:[%s4453_s4 + $0x2a0] ss:$36 sps:$4 sm:$0xff]   ;;  %v4057_v27 = vld [vmem:[%s4453_s4 + $0xf8] ss:$36 sps:$4 sm:$0xff]  }
 0x12c   : > { %2125 = vmatprep.mubr.bf16.mxu0 %v4003_v28  ;;  %2222 = vmatprep.mubr.bf16.mxu1 %v4005_v29 }
 0x133   : > { %2126 = vmatmul.mubr.bf16.gmra.mrb[84].mxu0 %v4007_v30  ;;  %2223 = vmatmul.mubr.bf16.gmra.mrb[84].mxu1 %v4008_v31 }
 0x134   : > { %2133 = vmatprep.mubr.bf16.mxu0 %v4009_v32  ;;  %2230 = vmatprep.mubr.bf16.mxu1 %v4011_v33  ;;  %v4058_v32 = vld [vmem:[%s4453_s4 + $0x2ec] ss:$36 sps:$4 sm:$0xff]   ;;  %v4060_v33 = vld [vmem:[%s4453_s4 + $0x140] ss:$36 sps:$4 sm:$0xff]  }
 0x13b   : > { %2134 = vmatmul.mubr.bf16.gmra.mrb[88].mxu0 %v4013_v34  ;;  %2231 = vmatmul.mubr.bf16.gmra.mrb[88].mxu1 %v4014_v35 }
 0x13c   : > { %2141 = vmatprep.mubr.bf16.mxu0 %v4016_v36  ;;  %2238 = vmatprep.mubr.bf16.mxu1 %v4018_v37 }
 0x143   : > { %2142 = vmatmul.mubr.bf16.gmra.mrb[92].mxu0 %v4020_v38  ;;  %2239 = vmatmul.mubr.bf16.gmra.mrb[92].mxu1 %v4021_v39 }
 0x144   : > { %2149 = vmatprep.mubr.bf16.mxu0 %v4022_v40  ;;  %2246 = vmatprep.mubr.bf16.mxu1 %v4024_v41 }
 0x14b   : > { %2150 = vmatmul.mubr.bf16.gmra.mrb[96].mxu0 %v4026_v42  ;;  %2247 = vmatmul.mubr.bf16.gmra.mrb[96].mxu1 %v4027_v43  ;;  %v4061_v42 = vld [vmem:[%s4453_s4 + $0x2e8] ss:$36 sps:$4 sm:$0xff]  }
 0x14c   : > { %2157 = vmatprep.mubr.bf16.mxu0 %v4029_v44  ;;  %2254 = vmatprep.mubr.bf16.mxu1 %v4031_v45  ;;  %v4062_v43 = vld [vmem:[%s4453_s4 + $0x188] ss:$36 sps:$4 sm:$0xff]  }
 0x153   : > { %2158 = vmatmul.mubr.bf16.gmra.mrb[100].mxu0 %v4033_v46  ;;  %2255 = vmatmul.mubr.bf16.gmra.mrb[100].mxu1 %v4034_v47 }
 0x154   : > { %2165 = vmatprep.mubr.bf16.mxu0 %v4035_v48  ;;  %2262 = vmatprep.mubr.bf16.mxu1 %v4037_v49  ;;  %v4063_v48 = vld [vmem:[%s4453_s4 + $0x334] ss:$36 sps:$4 sm:$0xff]  }
 0x155   : > { %v4065_v49 = vld [vmem:[%s4453_s4 + $0x1d0] ss:$36 sps:$4 sm:$0xff]  }
 0x15b   : > { %2166 = vmatmul.mubr.bf16.gmra.mrb[104].mxu0 %v4039_v50  ;;  %2263 = vmatmul.mubr.bf16.gmra.mrb[104].mxu1 %v4040_v51 }
 0x15c   : > { %2173 = vmatprep.mubr.bf16.mxu0 %v4042_v52  ;;  %2270 = vmatprep.mubr.bf16.mxu1 %v4044_v53 }
 0x15e   : > { %v3284_v54 = vpop.f32.mrb[0].mxu1  ;;  %v3212_v55 = vpop.f32.mrb[0].mxu0 }
 0x15f   : > { %v3285_v56 = vpop.f32.mrb[1].mxu1  ;;  %v3213_v57 = vpop.f32.mrb[1].mxu0 }
 0x160   : > { %v4575_v60 = vadd.f32 %v3285_v56, %v3284_v54  ;;  %v3287_v61 = vpop.f32.mrb[2].mxu1  ;;  %v4577_v62 = vadd.f32 %v3213_v57, %v3212_v55  ;;  %v3215_v63 = vpop.f32.mrb[2].mxu0  ;;  %v4621_v54 = vld [vmem:[#allocation7] ss:$0 sm:$0xff] }
 0x161   : > { %v3288_v2 = vpop.f32.mrb[3].mxu1  ;;  %v3216_v3 = vpop.f32.mrb[3].mxu0 }
 0x162   : > { %v4581_v4 = vadd.f32 %v3288_v2, %v3287_v61  ;;  %v4583_v5 = vadd.f32 %v3216_v3, %v3215_v63  ;;  %v4067_v61 = vld [vmem:[%s4453_s4 + $0x218] ss:$36 sps:$4 sm:$0xff]   ;;  %v1734_v63 = vadd.f32 %v4577_v62, %v4621_v54 }
 0x163   : > { %2174 = vmatmul.mubr.bf16.gmra.mrb[108].mxu0 %v4046_v58  ;;  %2271 = vmatmul.mubr.bf16.gmra.mrb[108].mxu1 %v4047_v59  ;;  %v4066_v59 = vld [vmem:[%s4453_s4 + $0x330] ss:$36 sps:$4 sm:$0xff]  }
 0x164   : > { %2278 = vmatprep.mubr.bf16.mxu1 %v4048_v0  ;;  %3684 = vmatprep.mubr.bf16.mxu0 %v4050_v1 }
 0x166   : > { %v3290_v6 = vpop.f32.mrb[4].mxu1  ;;  %v3218_v7 = vpop.f32.mrb[4].mxu0 }
 0x167   : > { %v3291_v8 = vpop.f32.mrb[5].mxu1  ;;  %v3219_v9 = vpop.f32.mrb[5].mxu0 }
 0x168   : > { %v4587_v12 = vadd.f32 %v3291_v8, %v3290_v6  ;;  %v3293_v13 = vpop.f32.mrb[6].mxu1  ;;  %v4589_v14 = vadd.f32 %v3219_v9, %v3218_v7  ;;  %v3221_v15 = vpop.f32.mrb[6].mxu0  ;;  %v4068_v6 = vld [vmem:[%s4453_s4 + $0x37c] ss:$36 sps:$4 sm:$0xff]  }
 0x169   : > { %v3294_v18 = vpop.f32.mrb[7].mxu1  ;;  %v3222_v19 = vpop.f32.mrb[7].mxu0  ;;  %v4070_v7 = vld [vmem:[%s4453_s4 + $0x260] ss:$36 sps:$4 sm:$0xff]  }
 0x16a   : > { %v4593_v20 = vadd.f32 %v3294_v18, %v3293_v13  ;;  %v4595_v21 = vadd.f32 %v3222_v19, %v3221_v15 }
 0x16b   : > { %2279 = vmatmul.mubr.bf16.gmra.mrb[112].mxu1 %v4051_v10  ;;  %3685 = vmatmul.mubr.bf16.vlgmr.msra.gmra.mrb[112].mxu0 %v4052_v11  ;;  %v1737_v10 = vadd.f32 %v4583_v5, %v4621_v54  ;;  %v1742_v5 = vadd.f32 %v4589_v14, %v4621_v54 }
 0x16c   : > { %2286 = vmatprep.mubr.bf16.mxu1 %v4053_v16  ;;  %3688 = vmatprep.mubr.bf16.mxu0 %v4055_v17 }
 0x16e   : > { %v3296_v22 = vpop.f32.mrb[8].mxu1  ;;  %v3224_v23 = vpop.f32.mrb[8].mxu0 }
 0x16f   : > { %v3297_v24 = vpop.f32.mrb[9].mxu1  ;;  %v3225_v25 = vpop.f32.mrb[9].mxu0 }
 0x170   : > { %v4599_v28 = vadd.f32 %v3297_v24, %v3296_v22  ;;  %v3299_v29 = vpop.f32.mrb[10].mxu1  ;;  %v4601_v30 = vadd.f32 %v3225_v25, %v3224_v23  ;;  %v3227_v31 = vpop.f32.mrb[10].mxu0  ;;  %v4071_v22 = vld [vmem:[%s4453_s4 + $0x378] ss:$36 sps:$4 sm:$0xff]   ;;  %v4072_v23 = vld [vmem:[%s4453_s4 + $0x2a8] ss:$36 sps:$4 sm:$0xff]  }
 0x171   : > { %v3300_v34 = vpop.f32.mrb[11].mxu1  ;;  %v3228_v35 = vpop.f32.mrb[11].mxu0 }
 0x172   : > { %v4605_v36 = vadd.f32 %v3300_v34, %v3299_v29  ;;  %v4607_v37 = vadd.f32 %v3228_v35, %v3227_v31  ;;  %v4073_v29 = vld [vmem:[%s4453_s4 + $0x3c4] ss:$36 sps:$4 sm:$0xff]   ;;  %v4075_v31 = vld [vmem:[%s4453_s4 + $0x2f0] ss:$36 sps:$4 sm:$0xff]   ;;  %v1745_v34 = vadd.f32 %v4595_v21, %v4621_v54  ;;  %v1750_v21 = vadd.f32 %v4601_v30, %v4621_v54 }
 0x173   : > { %2287 = vmatmul.mubr.bf16.gmra.mrb[116].mxu1 %v4056_v26  ;;  %3689 = vmatmul.mubr.bf16.gmra.mrb[116].mxu0 %v4057_v27 }
 0x174   : > { %2294 = vmatprep.mubr.bf16.mxu1 %v4058_v32  ;;  %3692 = vmatprep.mubr.bf16.mxu0 %v4060_v33 }
 0x176   : > { %v3302_v38 = vpop.f32.mrb[12].mxu1  ;;  %v3230_v39 = vpop.f32.mrb[12].mxu0 }
 0x177   : > { %v3303_v40 = vpop.f32.mrb[13].mxu1  ;;  %v3231_v41 = vpop.f32.mrb[13].mxu0 }
 0x178   : > { %v4611_v44 = vadd.f32 %v3303_v40, %v3302_v38  ;;  %v3305_v45 = vpop.f32.mrb[14].mxu1  ;;  %v4613_v46 = vadd.f32 %v3231_v41, %v3230_v39  ;;  %v3233_v47 = vpop.f32.mrb[14].mxu0 }
 0x179   : > { %v3306_v50 = vpop.f32.mrb[15].mxu1  ;;  %v3234_v51 = vpop.f32.mrb[15].mxu0 }
 0x17a   : > { %v4617_v52 = vadd.f32 %v3306_v50, %v3305_v45  ;;  %v4619_v53 = vadd.f32 %v3234_v51, %v3233_v47  ;;  %v4076_v45 = vld [vmem:[%s4453_s4 + $0x3c0] ss:$36 sps:$4 sm:$0xff]   ;;  %v4077_v47 = vld [vmem:[%s4453_s4 + $0x338] ss:$36 sps:$4 sm:$0xff]  }
 0x17b   : > { %2295 = vmatmul.mubr.bf16.gmra.mrb[120].mxu1 %v4061_v42  ;;  %3693 = vmatmul.mubr.bf16.gmra.mrb[120].mxu0 %v4062_v43 }
 0x17c   : > { %2302 = vmatprep.mubr.bf16.mxu1 %v4063_v48  ;;  %3696 = vmatprep.mubr.bf16.mxu0 %v4065_v49 }
 0x17e   : > { %v3324_v55 = vpop.f32.mrb[16].mxu1  ;;  %v3236_v56 = vpop.f32.mrb[16].mxu0 }
 0x17f   : > { %v3325_v57 = vpop.f32.mrb[17].mxu1  ;;  %v3237_v58 = vpop.f32.mrb[17].mxu0 }
 0x180   : > { %v3326_v0 = vadd.f32 %v3325_v57, %v3324_v55  ;;  %v3327_v1 = vpop.f32.mrb[18].mxu1  ;;  %v4627_v2 = vadd.f32 %v3237_v58, %v3236_v56  ;;  %v3239_v3 = vpop.f32.mrb[18].mxu0  ;;  %v4078_v55 = vld [vmem:[%s4453_s4 + $0x40c] ss:$36 sps:$4 sm:$0xff]   ;;  %v4080_v56 = vld [vmem:[%s4453_s4 + $0x380] ss:$36 sps:$4 sm:$0xff]  }
 0x181   : > { %v3328_v8 = vpop.f32.mrb[19].mxu1  ;;  %v3240_v9 = vpop.f32.mrb[19].mxu0 }
 0x182   : > { %v4633_v11 = vadd.f32 %v3326_v0, %v1734_v63  ;;  %v3329_v13 = vadd.f32 %v3328_v8, %v3327_v1  ;;  %v4635_v15 = vadd.f32 %v3240_v9, %v3239_v3  ;;  %v4081_v8 = vld [vmem:[%s4453_s4 + $0x408] ss:$36 sps:$4 sm:$0xff]  }
 0x183   : > { %2303 = vmatmul.mubr.bf16.gmra.mrb[124].mxu1 %v4066_v59  ;;  %3697 = vmatmul.mubr.bf16.gmra.mrb[124].mxu0 %v4067_v61  ;;  %v1753_v59 = vadd.f32 %v4607_v37, %v4621_v54  ;;  %v4082_v9 = vld [vmem:[%s4453_s4 + $0x3c8] ss:$36 sps:$4 sm:$0xff]   ;;  %v1758_v37 = vadd.f32 %v4613_v46, %v4621_v54 }
 0x184   : > { %v4637_v62 = vadd.f32 %v3329_v13, %v1737_v10  ;;  %2310 = vmatprep.mubr.bf16.mxu1 %v4068_v6  ;;  %3700 = vmatprep.mubr.bf16.mxu0 %v4070_v7 }
 0x186   : > { %v3330_v16 = vpop.f32.mrb[20].mxu1  ;;  %v3242_v17 = vpop.f32.mrb[20].mxu0 }
 0x187   : > { %v3331_v18 = vpop.f32.mrb[21].mxu1  ;;  %v3243_v19 = vpop.f32.mrb[21].mxu0 }
 0x188   : > { %v3332_v24 = vadd.f32 %v3331_v18, %v3330_v16  ;;  %v3333_v25 = vpop.f32.mrb[22].mxu1  ;;  %v4643_v26 = vadd.f32 %v3243_v19, %v3242_v17  ;;  %v3245_v27 = vpop.f32.mrb[22].mxu0  ;;  %v4083_v18 = vld [vmem:[%s4453_s4 + $0x454] ss:$36 sps:$4 sm:$0xff]  }
 0x189   : > { %v3334_v32 = vpop.f32.mrb[23].mxu1  ;;  %v3246_v33 = vpop.f32.mrb[23].mxu0  ;;  %v4085_v19 = vld [vmem:[%s4453_s4 + $0x410] ss:$36 sps:$4 sm:$0xff]  }
 0x18a   : > { %v4649_v35 = vadd.f32 %v3332_v24, %v1742_v5  ;;  %v3335_v38 = vadd.f32 %v3334_v32, %v3333_v25  ;;  %v4651_v39 = vadd.f32 %v3246_v33, %v3245_v27  ;;  %v1761_v5 = vadd.f32 %v4619_v53, %v4621_v54 }
 0x18b   : > { %2311 = vmatmul.mubr.bf16.gmra.mrb[128].mxu1 %v4071_v22  ;;  %3701 = vmatmul.mubr.bf16.gmra.mrb[128].mxu0 %v4072_v23  ;;  %v1766_v53 = vadd.f32 %v4627_v2, %v4621_v54 }
 0x18c   : > { %v4653_v14 = vadd.f32 %v3335_v38, %v1745_v34  ;;  %2318 = vmatprep.mubr.bf16.mxu1 %v4073_v29  ;;  %3704 = vmatprep.mubr.bf16.mxu0 %v4075_v31  ;;  %v4086_v34 = vld [vmem:[%s4453_s4 + $0x450] ss:$36 sps:$4 sm:$0xff]   ;;  %v4087_v38 = vld [vmem:[%s4453_s4 + $0x458] ss:$36 sps:$4 sm:$0xff]  }
 0x18e   : > { %v3336_v40 = vpop.f32.mrb[24].mxu1  ;;  %v3248_v41 = vpop.f32.mrb[24].mxu0 }
 0x18f   : > { %v3337_v42 = vpop.f32.mrb[25].mxu1  ;;  %v3249_v43 = vpop.f32.mrb[25].mxu0 }
 0x190   : > { %v3338_v48 = vadd.f32 %v3337_v42, %v3336_v40  ;;  %v3339_v49 = vpop.f32.mrb[26].mxu1  ;;  %v4659_v50 = vadd.f32 %v3249_v43, %v3248_v41  ;;  %v3251_v51 = vpop.f32.mrb[26].mxu0 }
 0x191   : > { %v3340_v57 = vpop.f32.mrb[27].mxu1  ;;  %v3252_v58 = vpop.f32.mrb[27].mxu0 }
 0x192   : > { %v4665_v61 = vadd.f32 %v3338_v48, %v1750_v21  ;;  %v3341_v63 = vadd.f32 %v3340_v57, %v3339_v49  ;;  %v4667_v0 = vadd.f32 %v3252_v58, %v3251_v51  ;;  %v1769_v21 = vadd.f32 %v4635_v15, %v4621_v54 }
 0x193   : > { %2319 = vmatmul.mubr.bf16.gmra.mrb[132].mxu1 %v4076_v45  ;;  %3705 = vmatmul.mubr.bf16.gmra.mrb[132].mxu0 %v4077_v47 }
 0x194   : > { %v4669_v30 = vadd.f32 %v3341_v63, %v1753_v59  ;;  %2326 = vmatprep.mubr.bf16.mxu1 %v4078_v55  ;;  %3708 = vmatprep.mubr.bf16.mxu0 %v4080_v56  ;;  %v1774_v59 = vadd.f32 %v4643_v26, %v4621_v54 }
 0x196   : > { %v3342_v1 = vpop.f32.mrb[28].mxu1  ;;  %v3254_v3 = vpop.f32.mrb[28].mxu0 }
 0x197   : > { %v3343_v6 = vpop.f32.mrb[29].mxu1  ;;  %v3255_v7 = vpop.f32.mrb[29].mxu0 }
 0x198   : > { %v3344_v10 = vadd.f32 %v3343_v6, %v3342_v1  ;;  %v3345_v13 = vpop.f32.mrb[30].mxu1  ;;  %v4675_v16 = vadd.f32 %v3255_v7, %v3254_v3  ;;  %v3257_v17 = vpop.f32.mrb[30].mxu0 }
 0x199   : > { %v3346_v22 = vpop.f32.mrb[31].mxu1  ;;  %v3258_v23 = vpop.f32.mrb[31].mxu0 }
 0x19a   : > { %v4681_v24 = vadd.f32 %v3344_v10, %v1758_v37  ;;  %v3347_v25 = vadd.f32 %v3346_v22, %v3345_v13  ;;  %v4683_v27 = vadd.f32 %v3258_v23, %v3257_v17  ;;  %v1782_v22 = vadd.f32 %v4659_v50, %v4621_v54 }
 0x19b   : > { %2327 = vmatmul.mubr.bf16.gmra.mrb[136].mxu1 %v4081_v8  ;;  %3709 = vmatmul.mubr.bf16.gmra.mrb[136].mxu0 %v4082_v9  ;;  %v1777_v8 = vadd.f32 %v4651_v39, %v4621_v54 }
 0x19c   : > { %v4685_v46 = vadd.f32 %v3347_v25, %v1761_v5  ;;  %2334 = vmatprep.mubr.bf16.mxu1 %v4083_v18  ;;  %3712 = vmatprep.mubr.bf16.mxu0 %v4085_v19 }
 0x19e   : > { %v3348_v29 = vpop.f32.mrb[32].mxu1  ;;  %v3260_v31 = vpop.f32.mrb[32].mxu0 }
 0x19f   : > { %v3349_v32 = vpop.f32.mrb[33].mxu1  ;;  %v3261_v33 = vpop.f32.mrb[33].mxu0 }
 0x1a0   : > { %v3350_v40 = vadd.f32 %v3349_v32, %v3348_v29  ;;  %v3351_v41 = vpop.f32.mrb[34].mxu1  ;;  %v4691_v42 = vadd.f32 %v3261_v33, %v3260_v31  ;;  %v3263_v43 = vpop.f32.mrb[34].mxu0  ;;  %v1785_v32 = vadd.f32 %v4667_v0, %v4621_v54 }
 0x1a1   : > { %v3352_v45 = vpop.f32.mrb[35].mxu1  ;;  %v3264_v47 = vpop.f32.mrb[35].mxu0 }
 0x1a2   : > { %v4695_v48 = vadd.f32 %v3350_v40, %v1766_v53  ;;  %v3353_v49 = vadd.f32 %v3352_v45, %v3351_v41  ;;  %v3265_v51 = vadd.f32 %v3264_v47, %v3263_v43  ;;  %v1790_v45 = vadd.f32 %v4675_v16, %v4621_v54 }
 0x1a3   : > { %2335 = vmatmul.mubr.bf16.gmra.mrb[140].mxu1 %v4086_v34  ;;  %3713 = vmatmul.mubr.bf16.gmra.mrb[140].mxu0 %v4087_v38 }
 0x1a4   : > { %v4697_v55 = vadd.f32 %v3353_v49, %v1769_v21 }
 0x1a6   : > { %v3354_v56 = vpop.f32.mrb[36].mxu1  ;;  %v3266_v2 = vpop.f32.mrb[36].mxu0 }
 0x1a7   : > { %v3355_v57 = vpop.f32.mrb[37].mxu1  ;;  %v3267_v58 = vpop.f32.mrb[37].mxu0 }
 0x1a8   : > { %v3356_v63 = vadd.f32 %v3355_v57, %v3354_v56  ;;  %v3357_v1 = vpop.f32.mrb[38].mxu1  ;;  %v4701_v3 = vadd.f32 %v3267_v58, %v3266_v2  ;;  %v3269_v15 = vpop.f32.mrb[38].mxu0  ;;  %v1793_v57 = vadd.f32 %v4683_v27, %v4621_v54  ;;  %v1801_v27 = vadd.f32 %v3265_v51, %v4621_v54 }
 0x1a9   : > { %v3358_v6 = vpop.f32.mrb[39].mxu1  ;;  %v3270_v7 = vpop.f32.mrb[39].mxu0 }
 0x1aa   : > { %v4705_v9 = vadd.f32 %v3356_v63, %v1774_v59  ;;  %v3359_v37 = vadd.f32 %v3358_v6, %v3357_v1  ;;  %v3271_v10 = vadd.f32 %v3270_v7, %v3269_v15  ;;  %v1806_v51 = vadd.f32 %v4701_v3, %v4621_v54 }
 0x1ac   : > { %v4707_v13 = vadd.f32 %v3359_v37, %v1777_v8  ;;  %v1798_v8 = vadd.f32 %v4691_v42, %v4621_v54 }
 0x1ae   : > { %v3360_v17 = vpop.f32.mrb[40].mxu1  ;;  %v3272_v18 = vpop.f32.mrb[40].mxu0 }
 0x1af   : > { %v3361_v19 = vpop.f32.mrb[41].mxu1  ;;  %v3273_v26 = vpop.f32.mrb[41].mxu0 }
 0x1b0   : > { %v3362_v23 = vadd.f32 %v3361_v19, %v3360_v17  ;;  %v3363_v5 = vpop.f32.mrb[42].mxu1  ;;  %v4711_v25 = vadd.f32 %v3273_v26, %v3272_v18  ;;  %v3275_v29 = vpop.f32.mrb[42].mxu0 }
 0x1b1   : > { %v3364_v31 = vpop.f32.mrb[43].mxu1  ;;  %v3276_v39 = vpop.f32.mrb[43].mxu0 }
 0x1b2   : > { %v4715_v33 = vadd.f32 %v3362_v23, %v1782_v22  ;;  %v3365_v34 = vadd.f32 %v3364_v31, %v3363_v5  ;;  %v4717_v38 = vadd.f32 %v3276_v39, %v3275_v29 }
 0x1b4   : > { %v4719_v53 = vadd.f32 %v3365_v34, %v1785_v32 }
 0x1b6   : > { %v3366_v40 = vpop.f32.mrb[44].mxu1  ;;  %v3278_v41 = vpop.f32.mrb[44].mxu0 }
 0x1b7   : > { %v3367_v50 = vpop.f32.mrb[45].mxu1  ;;  %v3279_v43 = vpop.f32.mrb[45].mxu0 }
 0x1b8   : > { %v3368_v47 = vadd.f32 %v3367_v50, %v3366_v40  ;;  %v3369_v21 = vpop.f32.mrb[46].mxu1  ;;  %v4723_v49 = vadd.f32 %v3279_v43, %v3278_v41  ;;  %v3281_v56 = vpop.f32.mrb[46].mxu0 }
 0x1b9   : > { %v3370_v0 = vpop.f32.mrb[47].mxu1  ;;  %v3282_v2 = vpop.f32.mrb[47].mxu0 }
 0x1ba   : > { %v4727_v58 = vadd.f32 %v3368_v47, %v1790_v45  ;;  %v3371_v59 = vadd.f32 %v3370_v0, %v3369_v21  ;;  %v4729_v63 = vadd.f32 %v3282_v2, %v3281_v56 }
 0x1bc   : > { %v4731_v1 = vadd.f32 %v3371_v59, %v1793_v57 }
 0x1be   : > { %v3372_v15 = vpop.f32.mrb[48].mxu1  ;;  %v3436_v6 = vpop.f32.mrb[48].mxu0 }
 0x1bf   : > { %v3373_v16 = vpop.f32.mrb[49].mxu1  ;;  %v3437_v7 = vpop.f32.mrb[49].mxu0 }
 0x1c0   : > { %v3374_v37 = vadd.f32 %v3373_v16, %v3372_v15  ;;  %v3438_v17 = vadd.f32 %v3437_v7, %v3436_v6  ;;  %v3375_v18 = vpop.f32.mrb[50].mxu1  ;;  %v3439_v19 = vpop.f32.mrb[50].mxu0 }
 0x1c1   : > { %v3376_v26 = vpop.f32.mrb[51].mxu1  ;;  %v3440_v22 = vpop.f32.mrb[51].mxu0 }
 0x1c2   : > { %v4736_v23 = vadd.f32 %v3374_v37, %v1798_v8  ;;  %v4739_v5 = vadd.f32 %v3438_v17, %v4633_v11  ;;  %v3377_v29 = vadd.f32 %v3376_v26, %v3375_v18  ;;  %v3441_v31 = vadd.f32 %v3440_v22, %v3439_v19 }
 0x1c3   : > { %v1809_v11 = vadd.f32 %v3271_v10, %v4621_v54  ;;  %v1814_v10 = vadd.f32 %v4711_v25, %v4621_v54 }
 0x1c4   : > { %v4741_v39 = vadd.f32 %v3377_v29, %v1801_v27  ;;  %v4744_v32 = vadd.f32 %v3441_v31, %v4637_v62 }
 0x1c6   : > { %v3378_v42 = vpop.f32.mrb[52].mxu1  ;;  %v3442_v34 = vpop.f32.mrb[52].mxu0 }
 0x1c7   : > { %v3379_v40 = vpop.f32.mrb[53].mxu1  ;;  %v3443_v41 = vpop.f32.mrb[53].mxu0 }
 0x1c8   : > { %v3380_v50 = vadd.f32 %v3379_v40, %v3378_v42  ;;  %v3444_v43 = vadd.f32 %v3443_v41, %v3442_v34  ;;  %v3381_v45 = vpop.f32.mrb[54].mxu1  ;;  %v3445_v47 = vpop.f32.mrb[54].mxu0 }
 0x1c9   : > { %v3382_v21 = vpop.f32.mrb[55].mxu1  ;;  %v3446_v56 = vpop.f32.mrb[55].mxu0 }
 0x1ca   : > { %v4749_v0 = vadd.f32 %v3380_v50, %v1806_v51  ;;  %v4752_v62 = vadd.f32 %v3444_v43, %v4649_v35  ;;  %v3383_v2 = vadd.f32 %v3382_v21, %v3381_v45  ;;  %v3447_v57 = vadd.f32 %v3446_v56, %v3445_v47 }
 0x1cb   : > { %v1817_v35 = vadd.f32 %v4717_v38, %v4621_v54  ;;  %v1822_v38 = vadd.f32 %v4723_v49, %v4621_v54 }
 0x1cc   : > { %v4754_v59 = vadd.f32 %v3383_v2, %v1809_v11  ;;  %v4757_v15 = vadd.f32 %v3447_v57, %v4653_v14 }
 0x1ce   : > { %v3384_v3 = vpop.f32.mrb[56].mxu1  ;;  %v3448_v6 = vpop.f32.mrb[56].mxu0 }
 0x1cf   : > { %v3385_v16 = vpop.f32.mrb[57].mxu1  ;;  %v3449_v7 = vpop.f32.mrb[57].mxu0 }
 0x1d0   : > { %v3386_v8 = vadd.f32 %v3385_v16, %v3384_v3  ;;  %v3450_v37 = vadd.f32 %v3449_v7, %v3448_v6  ;;  %v3387_v17 = vpop.f32.mrb[58].mxu1  ;;  %v3451_v18 = vpop.f32.mrb[58].mxu0 }
 0x1d1   : > { %v3388_v19 = vpop.f32.mrb[59].mxu1  ;;  %v3452_v27 = vpop.f32.mrb[59].mxu0 }
 0x1d2   : > { %v4763_v26 = vadd.f32 %v3386_v8, %v1814_v10  ;;  %v4766_v14 = vadd.f32 %v3450_v37, %v4665_v61  ;;  %v3389_v22 = vadd.f32 %v3388_v19, %v3387_v17  ;;  %v3453_v29 = vadd.f32 %v3452_v27, %v3451_v18 }
 0x1d3   : > { %v1825_v61 = vadd.f32 %v4729_v63, %v4621_v54  ;;  %v1830_v63 = vadd.f32 %v4575_v60, %v4621_v54 }
 0x1d4   : > { %v4768_v31 = vadd.f32 %v3389_v22, %v1817_v35  ;;  %v4771_v25 = vadd.f32 %v3453_v29, %v4669_v30 }
 0x1d6   : > { %v3390_v42 = vpop.f32.mrb[60].mxu1  ;;  %v3454_v34 = vpop.f32.mrb[60].mxu0 }
 0x1d7   : > { %v3391_v40 = vpop.f32.mrb[61].mxu1  ;;  %v3455_v41 = vpop.f32.mrb[61].mxu0 }
 0x1d8   : > { %v3392_v51 = vadd.f32 %v3391_v40, %v3390_v42  ;;  %v3456_v50 = vadd.f32 %v3455_v41, %v3454_v34  ;;  %v3393_v43 = vpop.f32.mrb[62].mxu1  ;;  %v3457_v45 = vpop.f32.mrb[62].mxu0 }
 0x1d9   : > { %v3394_v47 = vpop.f32.mrb[63].mxu1  ;;  %v3458_v11 = vpop.f32.mrb[63].mxu0 }
 0x1da   : > { %v4777_v21 = vadd.f32 %v3392_v51, %v1822_v38  ;;  %v4780_v30 = vadd.f32 %v3456_v50, %v4681_v24  ;;  %v3395_v56 = vadd.f32 %v3394_v47, %v3393_v43  ;;  %v3459_v2 = vadd.f32 %v3458_v11, %v3457_v45 }
 0x1db   : > { %v1833_v24 = vadd.f32 %v4581_v4, %v4621_v54  ;;  %v1838_v4 = vadd.f32 %v4587_v12, %v4621_v54 }
 0x1dc   : > { %v4782_v57 = vadd.f32 %v3395_v56, %v1825_v61  ;;  %v4785_v49 = vadd.f32 %v3459_v2, %v4685_v46 }
 0x1de   : > { %v3396_v3 = vpop.f32.mrb[64].mxu1  ;;  %v3460_v6 = vpop.f32.mrb[64].mxu0 }
 0x1df   : > { %v3397_v16 = vpop.f32.mrb[65].mxu1  ;;  %v3461_v7 = vpop.f32.mrb[65].mxu0 }
 0x1e0   : > { %v3398_v10 = vadd.f32 %v3397_v16, %v3396_v3  ;;  %v3462_v8 = vadd.f32 %v3461_v7, %v3460_v6  ;;  %v3399_v37 = vpop.f32.mrb[66].mxu1  ;;  %v3463_v17 = vpop.f32.mrb[66].mxu0 }
 0x1e1   : > { %v3400_v18 = vpop.f32.mrb[67].mxu1  ;;  %v3464_v35 = vpop.f32.mrb[67].mxu0 }
 0x1e2   : > { %v4791_v19 = vadd.f32 %v3398_v10, %v1830_v63  ;;  %v4794_v46 = vadd.f32 %v3462_v8, %v4695_v48  ;;  %v3401_v27 = vadd.f32 %v3400_v18, %v3399_v37  ;;  %v3465_v22 = vadd.f32 %v3464_v35, %v3463_v17 }
 0x1e3   : > { %v1841_v48 = vadd.f32 %v4593_v20, %v4621_v54  ;;  %v1846_v20 = vadd.f32 %v4599_v28, %v4621_v54 }
 0x1e4   : > { %v4796_v29 = vadd.f32 %v3401_v27, %v1833_v24  ;;  %v4799_v60 = vadd.f32 %v3465_v22, %v4697_v55 }
 0x1e6   : > { %v3402_v42 = vpop.f32.mrb[68].mxu1  ;;  %v3466_v34 = vpop.f32.mrb[68].mxu0 }
 0x1e7   : > { %v3403_v40 = vpop.f32.mrb[69].mxu1  ;;  %v3467_v41 = vpop.f32.mrb[69].mxu0 }
 0x1e8   : > { %v3404_v38 = vadd.f32 %v3403_v40, %v3402_v42  ;;  %v3468_v51 = vadd.f32 %v3467_v41, %v3466_v34  ;;  %v3405_v50 = vpop.f32.mrb[70].mxu1  ;;  %v3469_v43 = vpop.f32.mrb[70].mxu0 }
 0x1e9   : > { %v3406_v45 = vpop.f32.mrb[71].mxu1  ;;  %v3470_v61 = vpop.f32.mrb[71].mxu0 }
 0x1ea   : > { %v4805_v47 = vadd.f32 %v3404_v38, %v1838_v4  ;;  %v4808_v55 = vadd.f32 %v3468_v51, %v4705_v9  ;;  %v3407_v11 = vadd.f32 %v3406_v45, %v3405_v50  ;;  %v3471_v56 = vadd.f32 %v3470_v61, %v3469_v43 }
 0x1eb   : > { %v1849_v9 = vadd.f32 %v4605_v36, %v4621_v54  ;;  %v1854_v36 = vadd.f32 %v4611_v44, %v4621_v54 }
 0x1ec   : > { %v4810_v2 = vadd.f32 %v3407_v11, %v1841_v48  ;;  %v4813_v12 = vadd.f32 %v3471_v56, %v4707_v13 }
 0x1ee   : > { %v3408_v3 = vpop.f32.mrb[72].mxu1  ;;  %v3472_v6 = vpop.f32.mrb[72].mxu0 }
 0x1ef   : > { %v3409_v16 = vpop.f32.mrb[73].mxu1  ;;  %v3473_v7 = vpop.f32.mrb[73].mxu0 }
 0x1f0   : > { %v3410_v63 = vadd.f32 %v3409_v16, %v3408_v3  ;;  %v3474_v10 = vadd.f32 %v3473_v7, %v3472_v6  ;;  %v3411_v8 = vpop.f32.mrb[74].mxu1  ;;  %v3475_v37 = vpop.f32.mrb[74].mxu0 }
 0x1f1   : > { %v3412_v17 = vpop.f32.mrb[75].mxu1  ;;  %v3476_v24 = vpop.f32.mrb[75].mxu0 }
 0x1f2   : > { %v4819_v18 = vadd.f32 %v3410_v63, %v1846_v20  ;;  %v4822_v13 = vadd.f32 %v3474_v10, %v4715_v33  ;;  %v3413_v35 = vadd.f32 %v3412_v17, %v3411_v8  ;;  %v3477_v27 = vadd.f32 %v3476_v24, %v3475_v37 }
 0x1f3   : > { %v1857_v33 = vadd.f32 %v4617_v52, %v4621_v54 }
 0x1f4   : > { %v4824_v22 = vadd.f32 %v3413_v35, %v1849_v9  ;;  %v4827_v28 = vadd.f32 %v3477_v27, %v4719_v53 }
 0x1f6   : > { %v3414_v42 = vpop.f32.mrb[76].mxu1  ;;  %v3478_v34 = vpop.f32.mrb[76].mxu0 }
 0x1f7   : > { %v3415_v40 = vpop.f32.mrb[77].mxu1  ;;  %v3479_v41 = vpop.f32.mrb[77].mxu0 }
 0x1f8   : > { %v3416_v4 = vadd.f32 %v3415_v40, %v3414_v42  ;;  %v3480_v38 = vadd.f32 %v3479_v41, %v3478_v34  ;;  %v3417_v51 = vpop.f32.mrb[78].mxu1  ;;  %v3481_v50 = vpop.f32.mrb[78].mxu0 }
 0x1f9   : > { %v3418_v43 = vpop.f32.mrb[79].mxu1  ;;  %v3482_v48 = vpop.f32.mrb[79].mxu0 }
 0x1fa   : > { %v4833_v45 = vadd.f32 %v3416_v4, %v1854_v36  ;;  %v4836_v53 = vadd.f32 %v3480_v38, %v4727_v58  ;;  %v3419_v61 = vadd.f32 %v3418_v43, %v3417_v51  ;;  %v3483_v11 = vadd.f32 %v3482_v48, %v3481_v50 }
 0x1fc   : > { %v4838_v56 = vadd.f32 %v3419_v61, %v1857_v33  ;;  %v4841_v44 = vadd.f32 %v3483_v11, %v4731_v1 }
 0x1fe   : > { %v3484_v3 = vpop.f32.mrb[80].mxu0  ;;  %v3548_v6 = vpop.f32.mrb[80].mxu1 }
 0x1ff   : > { %v3485_v16 = vpop.f32.mrb[81].mxu0  ;;  %v3549_v7 = vpop.f32.mrb[81].mxu1 }
 0x200   : > { %v3486_v20 = vadd.f32 %v3485_v16, %v3484_v3  ;;  %v3550_v52 = vadd.f32 %v3549_v7, %v3548_v6  ;;  %v3487_v54 = vpop.f32.mrb[82].mxu0  ;;  %v3551_v63 = vpop.f32.mrb[82].mxu1 }
 0x201   : > { %v3488_v10 = vpop.f32.mrb[83].mxu0  ;;  %v3552_v8 = vpop.f32.mrb[83].mxu1 }
 0x202   : > { %v4844_v58 = vadd.f32 %v3486_v20, %v4736_v23  ;;  %v3489_v37 = vadd.f32 %v3488_v10, %v3487_v54  ;;  %v3553_v9 = vadd.f32 %v3552_v8, %v3551_v63  ;;  %v4847_v17 = vadd.f32 %v3550_v52, %v4739_v5 }
 0x204   : > { %v4850_v1 = vadd.f32 %v3489_v37, %v4741_v39  ;;  %v4853_v24 = vadd.f32 %v3553_v9, %v4744_v32 }
 0x206   : > { %v3490_v35 = vpop.f32.mrb[84].mxu0  ;;  %v3554_v27 = vpop.f32.mrb[84].mxu1 }
 0x207   : > { %v3491_v42 = vpop.f32.mrb[85].mxu0  ;;  %v3555_v34 = vpop.f32.mrb[85].mxu1 }
 0x208   : > { %v3492_v40 = vadd.f32 %v3491_v42, %v3490_v35  ;;  %v3556_v41 = vadd.f32 %v3555_v34, %v3554_v27  ;;  %v3493_v36 = vpop.f32.mrb[86].mxu0  ;;  %v3557_v23 = vpop.f32.mrb[86].mxu1 }
 0x209   : > { %v3494_v4 = vpop.f32.mrb[87].mxu0  ;;  %v3558_v38 = vpop.f32.mrb[87].mxu1 }
 0x20a   : > { %v4856_v51 = vadd.f32 %v3492_v40, %v4749_v0  ;;  %v3495_v5 = vadd.f32 %v3494_v4, %v3493_v36  ;;  %v3559_v50 = vadd.f32 %v3558_v38, %v3557_v23  ;;  %v4859_v39 = vadd.f32 %v3556_v41, %v4752_v62 }
 0x20c   : > { %v4862_v32 = vadd.f32 %v3495_v5, %v4754_v59  ;;  %v4865_v33 = vadd.f32 %v3559_v50, %v4757_v15 }
 0x20e   : > { %v3496_v43 = vpop.f32.mrb[88].mxu0  ;;  %v3560_v48 = vpop.f32.mrb[88].mxu1 }
 0x20f   : > { %v3497_v61 = vpop.f32.mrb[89].mxu0  ;;  %v3561_v11 = vpop.f32.mrb[89].mxu1 }
 0x210   : > { %v3498_v3 = vadd.f32 %v3497_v61, %v3496_v43  ;;  %v3562_v6 = vadd.f32 %v3561_v11, %v3560_v48  ;;  %v3499_v16 = vpop.f32.mrb[90].mxu0  ;;  %v3563_v0 = vpop.f32.mrb[90].mxu1 }
 0x211   : > { %v3500_v7 = vpop.f32.mrb[91].mxu0  ;;  %v3564_v20 = vpop.f32.mrb[91].mxu1 }
 0x212   : > { %v4868_v52 = vadd.f32 %v3498_v3, %v4763_v26  ;;  %v3501_v62 = vadd.f32 %v3500_v7, %v3499_v16  ;;  %v3565_v54 = vadd.f32 %v3564_v20, %v3563_v0  ;;  %v4871_v59 = vadd.f32 %v3562_v6, %v4766_v14 }
 0x214   : > { %v4874_v15 = vadd.f32 %v3501_v62, %v4768_v31  ;;  %v4877_v63 = vadd.f32 %v3565_v54, %v4771_v25 }
 0x216   : > { %v3502_v10 = vpop.f32.mrb[92].mxu0  ;;  %v3566_v8 = vpop.f32.mrb[92].mxu1 }
 0x217   : > { %v3503_v37 = vpop.f32.mrb[93].mxu0  ;;  %v3567_v9 = vpop.f32.mrb[93].mxu1 }
 0x218   : > { %v3504_v35 = vadd.f32 %v3503_v37, %v3502_v10  ;;  %v3568_v27 = vadd.f32 %v3567_v9, %v3566_v8  ;;  %v3505_v42 = vpop.f32.mrb[94].mxu0  ;;  %v3569_v26 = vpop.f32.mrb[94].mxu1 }
 0x219   : > { %v3506_v34 = vpop.f32.mrb[95].mxu0  ;;  %v3570_v40 = vpop.f32.mrb[95].mxu1 }
 0x21a   : > { %v4880_v41 = vadd.f32 %v3504_v35, %v4777_v21  ;;  %v3507_v14 = vadd.f32 %v3506_v34, %v3505_v42  ;;  %v3571_v36 = vadd.f32 %v3570_v40, %v3569_v26  ;;  %v4883_v31 = vadd.f32 %v3568_v27, %v4780_v30 }
 0x21c   : > { %v4886_v25 = vadd.f32 %v3507_v14, %v4782_v57  ;;  %v4889_v23 = vadd.f32 %v3571_v36, %v4785_v49 }
 0x21e   : > { %v3508_v4 = vpop.f32.mrb[96].mxu0  ;;  %v3572_v38 = vpop.f32.mrb[96].mxu1 }
 0x21f   : > { %v3509_v5 = vpop.f32.mrb[97].mxu0  ;;  %v3573_v50 = vpop.f32.mrb[97].mxu1 }
 0x220   : > { %v3510_v43 = vadd.f32 %v3509_v5, %v3508_v4  ;;  %v3574_v48 = vadd.f32 %v3573_v50, %v3572_v38  ;;  %v3511_v61 = vpop.f32.mrb[98].mxu0  ;;  %v3575_v21 = vpop.f32.mrb[98].mxu1 }
 0x221   : > { %v3512_v11 = vpop.f32.mrb[99].mxu0  ;;  %v3576_v3 = vpop.f32.mrb[99].mxu1 }
 0x222   : > { %v4892_v6 = vadd.f32 %v3510_v43, %v4791_v19  ;;  %v3513_v30 = vadd.f32 %v3512_v11, %v3511_v61  ;;  %v3577_v16 = vadd.f32 %v3576_v3, %v3575_v21  ;;  %v4895_v57 = vadd.f32 %v3574_v48, %v4794_v46 }
 0x224   : > { %v4898_v49 = vadd.f32 %v3513_v30, %v4796_v29  ;;  %v4901_v0 = vadd.f32 %v3577_v16, %v4799_v60 }
 0x226   : > { %v3514_v7 = vpop.f32.mrb[100].mxu0  ;;  %v3578_v20 = vpop.f32.mrb[100].mxu1 }
 0x227   : > { %v3515_v62 = vpop.f32.mrb[101].mxu0  ;;  %v3579_v54 = vpop.f32.mrb[101].mxu1 }
 0x228   : > { %v3516_v10 = vadd.f32 %v3515_v62, %v3514_v7  ;;  %v3580_v8 = vadd.f32 %v3579_v54, %v3578_v20  ;;  %v3517_v37 = vpop.f32.mrb[102].mxu0  ;;  %v3581_v19 = vpop.f32.mrb[102].mxu1 }
 0x229   : > { %v3518_v9 = vpop.f32.mrb[103].mxu0  ;;  %v3582_v35 = vpop.f32.mrb[103].mxu1 }
 0x22a   : > { %v4904_v27 = vadd.f32 %v3516_v10, %v4805_v47  ;;  %v3519_v46 = vadd.f32 %v3518_v9, %v3517_v37  ;;  %v3583_v42 = vadd.f32 %v3582_v35, %v3581_v19  ;;  %v4907_v29 = vadd.f32 %v3580_v8, %v4808_v55 }
 0x22c   : > { %v4910_v60 = vadd.f32 %v3519_v46, %v4810_v2  ;;  %v4913_v26 = vadd.f32 %v3583_v42, %v4813_v12 }
 0x22e   : > { %v3520_v34 = vpop.f32.mrb[104].mxu0  ;;  %v3584_v40 = vpop.f32.mrb[104].mxu1 }
 0x22f   : > { %v3521_v14 = vpop.f32.mrb[105].mxu0  ;;  %v3585_v36 = vpop.f32.mrb[105].mxu1 }
 0x230   : > { %v3522_v4 = vadd.f32 %v3521_v14, %v3520_v34  ;;  %v3586_v38 = vadd.f32 %v3585_v36, %v3584_v40  ;;  %v3523_v5 = vpop.f32.mrb[106].mxu0  ;;  %v3587_v47 = vpop.f32.mrb[106].mxu1 }
 0x231   : > { %v3524_v50 = vpop.f32.mrb[107].mxu0  ;;  %v3588_v43 = vpop.f32.mrb[107].mxu1 }
 0x232   : > { %v4916_v48 = vadd.f32 %v3522_v4, %v4819_v18  ;;  %v3525_v55 = vadd.f32 %v3524_v50, %v3523_v5  ;;  %v3589_v61 = vadd.f32 %v3588_v43, %v3587_v47  ;;  %v4919_v2 = vadd.f32 %v3586_v38, %v4822_v13 }
 0x234   : > { %v4922_v12 = vadd.f32 %v3525_v55, %v4824_v22  ;;  %v4925_v21 = vadd.f32 %v3589_v61, %v4827_v28 }
 0x236   : > { %v3526_v11 = vpop.f32.mrb[108].mxu0  ;;  %v3590_v3 = vpop.f32.mrb[108].mxu1 }
 0x237   : > { %v3527_v30 = vpop.f32.mrb[109].mxu0  ;;  %v3591_v16 = vpop.f32.mrb[109].mxu1 }
 0x238   : > { %v3528_v7 = vadd.f32 %v3527_v30, %v3526_v11  ;;  %v3592_v20 = vadd.f32 %v3591_v16, %v3590_v3  ;;  %v3529_v62 = vpop.f32.mrb[110].mxu0  ;;  %v3593_v18 = vpop.f32.mrb[110].mxu1 }
 0x239   : > { %v3530_v54 = vpop.f32.mrb[111].mxu0  ;;  %v3594_v10 = vpop.f32.mrb[111].mxu1 }
 0x23a   : > { %v4928_v13 = vadd.f32 %v3528_v7, %v4833_v45  ;;  %v3531_v8 = vadd.f32 %v3530_v54, %v3529_v62  ;;  %v3595_v22 = vadd.f32 %v3594_v10, %v3593_v18  ;;  %v4931_v37 = vadd.f32 %v3592_v20, %v4836_v53 }
 0x23c   : > { %v4934_v28 = vadd.f32 %v3531_v8, %v4838_v56  ;;  %v4937_v19 = vadd.f32 %v3595_v22, %v4841_v44 }
 0x23e   : > { %v3596_v9 = vpop.f32.mrb[112].mxu1  ;;  %v3686_v35 = vpop.f32.mrb[112].mxu0 }
 0x23f   : > { %v2386_v46 = vadd.f32 %v3686_v35, %v4859_v39  ;;  %v3597_v42 = vpop.f32.mrb[113].mxu1  ;;  %v2377_v34 = vpop.f32.mrb[113].mxu0 }
 0x240   : > { %v3598_v40 = vadd.f32 %v3597_v42, %v3596_v9  ;;  %v2378_v45 = vadd.f32 %v2377_v34, %v4847_v17  ;;  %v3599_v14 = vpop.f32.mrb[114].mxu1  ;;  %v3687_v36 = vpop.f32.mrb[114].mxu0 }
 0x241   : > { %v2389_v53 = vadd.f32 %v3687_v36, %v4865_v33  ;;  %v3600_v4 = vpop.f32.mrb[115].mxu1  ;;  %v2380_v56 = vpop.f32.mrb[115].mxu0  ;;  %v2506_v47 = vmax.f32 %v2386_v46, 0.0 }
 0x242   : > { %v3601_v38 = vadd.f32 %v3600_v4, %v3599_v14  ;;  %v2381_v44 = vadd.f32 %v2380_v56, %v4853_v24  ;;  %v4945_v5 = vadd.f32 %v3598_v40, %v4844_v58  ;;  %v2504_v50 = vmax.f32 %v2378_v45, 0.0 }
 0x243   : > { %v2507_v39 = vmax.f32 %v2389_v53, 0.0 }
 0x244   : > { %v2505_v43 = vmax.f32 %v2381_v44, 0.0  ;;  %v4948_v55 = vadd.f32 %v3601_v38, %v4850_v1 }
 0x245   : > { %v3109_v17 = vpack.c.bf16 %v2507_v39, %v2506_v47 }
 0x246   : > { %v3104_v61 = vpack.c.bf16 %v2505_v43, %v2504_v50  ;;  %v3602_v11 = vpop.f32.mrb[116].mxu1  ;;  %v3690_v3 = vpop.f32.mrb[116].mxu0 }
 0x247   : > { %3181 = vst [vmem:[%s4950_s20 + $0x8] sm:$0xff] %v3109_v17   ;;  %v2402_v24 = vadd.f32 %v3690_v3, %v4883_v31  ;;  %v3603_v58 = vpop.f32.mrb[117].mxu1  ;;  %v2393_v33 = vpop.f32.mrb[117].mxu0 }
 0x248   : > { %3105 = vst [vmem:[%s4950_s20] sm:$0xff] %v3104_v61   ;;  %v3604_v30 = vadd.f32 %v3603_v58, %v3602_v11  ;;  %v2394_v16 = vadd.f32 %v2393_v33, %v4871_v59  ;;  %v3605_v7 = vpop.f32.mrb[118].mxu1  ;;  %v3691_v1 = vpop.f32.mrb[118].mxu0 }
 0x249   : > { %v2405_v20 = vadd.f32 %v3691_v1, %v4889_v23  ;;  %v3606_v62 = vpop.f32.mrb[119].mxu1  ;;  %v2396_v18 = vpop.f32.mrb[119].mxu0  ;;  %v2510_v31 = vmax.f32 %v2402_v24, 0.0 }
 0x24a   : > { %v3607_v54 = vadd.f32 %v3606_v62, %v3605_v7  ;;  %v2397_v10 = vadd.f32 %v2396_v18, %v4877_v63  ;;  %v2289_v8 = vadd.f32 %v3604_v30, %v4856_v51  ;;  %v2508_v9 = vmax.f32 %v2394_v16, 0.0 }
 0x24b   : > { %v2511_v22 = vmax.f32 %v2405_v20, 0.0 }
 0x24c   : > { %v2509_v35 = vmax.f32 %v2397_v10, 0.0  ;;  %v2292_v46 = vadd.f32 %v3607_v54, %v4862_v32 }
 0x24d   : > { %v3119_v59 = vpack.c.bf16 %v2511_v22, %v2510_v31 }
 0x24e   : > { %v3114_v42 = vpack.c.bf16 %v2509_v35, %v2508_v9  ;;  %v3608_v34 = vpop.f32.mrb[120].mxu1  ;;  %v3694_v40 = vpop.f32.mrb[120].mxu0 }
 0x24f   : > { %3183 = vst [vmem:[%s4950_s20 + $0x18] sm:$0xff] %v3119_v59   ;;  %v2418_v23 = vadd.f32 %v3694_v40, %v4907_v29  ;;  %v3609_v45 = vpop.f32.mrb[121].mxu1  ;;  %v2409_v14 = vpop.f32.mrb[121].mxu0 }
 0x250   : > { %3182 = vst [vmem:[%s4950_s20 + $0x10] sm:$0xff] %v3114_v42   ;;  %v3610_v36 = vadd.f32 %v3609_v45, %v3608_v34  ;;  %v2410_v63 = vadd.f32 %v2409_v14, %v4895_v57  ;;  %v3611_v51 = vpop.f32.mrb[122].mxu1  ;;  %v3695_v53 = vpop.f32.mrb[122].mxu0 }
 0x251   : > { %v2421_v4 = vadd.f32 %v3695_v53, %v4913_v26  ;;  %v3612_v56 = vpop.f32.mrb[123].mxu1  ;;  %v2412_v32 = vpop.f32.mrb[123].mxu0  ;;  %v2514_v29 = vmax.f32 %v2418_v23, 0.0 }
 0x252   : > { %v3613_v38 = vadd.f32 %v3612_v56, %v3611_v51  ;;  %v2413_v44 = vadd.f32 %v2412_v32, %v4901_v0  ;;  %v4967_v47 = vadd.f32 %v3610_v36, %v4868_v52  ;;  %v2512_v50 = vmax.f32 %v2410_v63, 0.0 }
 0x253   : > { %v2515_v39 = vmax.f32 %v2421_v4, 0.0 }
 0x254   : > { %v2513_v43 = vmax.f32 %v2413_v44, 0.0  ;;  %v4970_v57 = vadd.f32 %v3613_v38, %v4874_v15 }
 0x255   : > { %v3129_v17 = vpack.c.bf16 %v2515_v39, %v2514_v29 }
 0x256   : > { %v3124_v61 = vpack.c.bf16 %v2513_v43, %v2512_v50  ;;  %v3614_v11 = vpop.f32.mrb[124].mxu1  ;;  %v3698_v26 = vpop.f32.mrb[124].mxu0 }
 0x257   : > { %3185 = vst [vmem:[%s4950_s20 + $0x28] sm:$0xff] %v3129_v17   ;;  %v2434_v3 = vadd.f32 %v3698_v26, %v4931_v37  ;;  %v3615_v24 = vpop.f32.mrb[125].mxu1  ;;  %v2425_v58 = vpop.f32.mrb[125].mxu0 }
 0x258   : > { %3184 = vst [vmem:[%s4950_s20 + $0x20] sm:$0xff] %v3124_v61   ;;  %v3616_v0 = vadd.f32 %v3615_v24, %v3614_v11  ;;  %v2426_v52 = vadd.f32 %v2425_v58, %v4919_v2  ;;  %v3617_v33 = vpop.f32.mrb[126].mxu1  ;;  %v3699_v30 = vpop.f32.mrb[126].mxu0 }
 0x259   : > { %v2437_v16 = vadd.f32 %v3699_v30, %v4937_v19  ;;  %v3618_v15 = vpop.f32.mrb[127].mxu1  ;;  %v2428_v7 = vpop.f32.mrb[127].mxu0  ;;  %v2518_v37 = vmax.f32 %v2434_v3, 0.0 }
 0x25a   : > { %v3619_v1 = vadd.f32 %v3618_v15, %v3617_v33  ;;  %v2429_v20 = vadd.f32 %v2428_v7, %v4925_v21  ;;  %v2305_v62 = vadd.f32 %v3616_v0, %v4880_v41  ;;  %v2516_v54 = vmax.f32 %v2426_v52, 0.0 }
 0x25b   : > { %v2519_v18 = vmax.f32 %v2437_v16, 0.0 }
 0x25c   : > { %v2517_v10 = vmax.f32 %v2429_v20, 0.0  ;;  %v2308_v31 = vadd.f32 %v3619_v1, %v4886_v25 }
 0x25d   : > { %v3139_v2 = vpack.c.bf16 %v2519_v18, %v2518_v37 }
 0x25e   : > { %v3134_v22 = vpack.c.bf16 %v2517_v10, %v2516_v54  ;;  %v3620_v9 = vpop.f32.mrb[128].mxu1  ;;  %v3702_v35 = vpop.f32.mrb[128].mxu0 }
 0x25f   : > { %3187 = vst [vmem:[%s4950_s20 + $0x38] sm:$0xff] %v3139_v2   ;;  %v2450_v19 = vadd.f32 %v3702_v35, %v2289_v8  ;;  %v3621_v59 = vpop.f32.mrb[129].mxu1  ;;  %v2441_v42 = vpop.f32.mrb[129].mxu0 }
 0x260   : > { %3186 = vst [vmem:[%s4950_s20 + $0x30] sm:$0xff] %v3134_v22   ;;  %v3622_v34 = vadd.f32 %v3621_v59, %v3620_v9  ;;  %v2442_v21 = vadd.f32 %v2441_v42, %v4945_v5  ;;  %v3623_v40 = vpop.f32.mrb[130].mxu1  ;;  %v3703_v41 = vpop.f32.mrb[130].mxu0 }
 0x261   : > { %v2453_v23 = vadd.f32 %v3703_v41, %v2292_v46  ;;  %v3624_v45 = vpop.f32.mrb[131].mxu1  ;;  %v2444_v14 = vpop.f32.mrb[131].mxu0  ;;  %v2522_v51 = vmax.f32 %v2450_v19, 0.0 }
 0x262   : > { %v3625_v36 = vadd.f32 %v3624_v45, %v3623_v40  ;;  %v2445_v25 = vadd.f32 %v2444_v14, %v4948_v55  ;;  %v2313_v63 = vadd.f32 %v3622_v34, %v4892_v6  ;;  %v2520_v53 = vmax.f32 %v2442_v21, 0.0 }
 0x263   : > { %v2523_v8 = vmax.f32 %v2453_v23, 0.0 }
 0x264   : > { %v2521_v4 = vmax.f32 %v2445_v25, 0.0  ;;  %v2316_v56 = vadd.f32 %v3625_v36, %v4898_v49 }
 0x265   : > { %v3149_v32 = vpack.c.bf16 %v2523_v8, %v2522_v51 }
 0x266   : > { %v3144_v5 = vpack.c.bf16 %v2521_v4, %v2520_v53  ;;  %v3626_v38 = vpop.f32.mrb[132].mxu1  ;;  %v3706_v44 = vpop.f32.mrb[132].mxu0 }
 0x267   : > { %3189 = vst [vmem:[%s4950_s20 + $0x48] sm:$0xff] %v3149_v32   ;;  %v2466_v46 = vadd.f32 %v3706_v44, %v2305_v62  ;;  %v3627_v29 = vpop.f32.mrb[133].mxu1  ;;  %v2457_v39 = vpop.f32.mrb[133].mxu0 }
 0x268   : > { %3188 = vst [vmem:[%s4950_s20 + $0x40] sm:$0xff] %v3144_v5   ;;  %v3628_v50 = vadd.f32 %v3627_v29, %v3626_v38  ;;  %v2458_v55 = vadd.f32 %v2457_v39, %v4967_v47  ;;  %v3629_v43 = vpop.f32.mrb[134].mxu1  ;;  %v3707_v6 = vpop.f32.mrb[134].mxu0 }
 0x269   : > { %v2469_v17 = vadd.f32 %v3707_v6, %v2308_v31  ;;  %v3630_v61 = vpop.f32.mrb[135].mxu1  ;;  %v2460_v11 = vpop.f32.mrb[135].mxu0  ;;  %v2526_v24 = vmax.f32 %v2466_v46, 0.0 }
 0x26a   : > { %v3631_v26 = vadd.f32 %v3630_v61, %v3629_v43  ;;  %v2461_v49 = vadd.f32 %v2460_v11, %v4970_v57  ;;  %v2321_v3 = vadd.f32 %v3628_v50, %v4904_v27  ;;  %v2524_v0 = vmax.f32 %v2458_v55, 0.0 }
 0x26b   : > { %v2527_v58 = vmax.f32 %v2469_v17, 0.0 }
 0x26c   : > { %v2525_v52 = vmax.f32 %v2461_v49, 0.0  ;;  %v2324_v33 = vadd.f32 %v3631_v26, %v4910_v60 }
 0x26d   : > { %v3159_v30 = vpack.c.bf16 %v2527_v58, %v2526_v24 }
 0x26e   : > { %v3154_v47 = vpack.c.bf16 %v2525_v52, %v2524_v0  ;;  %v3632_v16 = vpop.f32.mrb[136].mxu1  ;;  %v3710_v15 = vpop.f32.mrb[136].mxu0 }
 0x26f   : > { %3191 = vst [vmem:[%s4950_s20 + $0x58] sm:$0xff] %v3159_v30   ;;  %v2482_v7 = vadd.f32 %v3710_v15, %v2321_v3  ;;  %v3633_v1 = vpop.f32.mrb[137].mxu1  ;;  %v2473_v20 = vpop.f32.mrb[137].mxu0 }
 0x270   : > { %3190 = vst [vmem:[%s4950_s20 + $0x50] sm:$0xff] %v3154_v47   ;;  %v3634_v62 = vadd.f32 %v3633_v1, %v3632_v16  ;;  %v2474_v37 = vadd.f32 %v2473_v20, %v2313_v63  ;;  %v3635_v57 = vpop.f32.mrb[138].mxu1  ;;  %v3711_v18 = vpop.f32.mrb[138].mxu0 }
 0x271   : > { %v2485_v27 = vadd.f32 %v3711_v18, %v2324_v33  ;;  %v3636_v54 = vpop.f32.mrb[139].mxu1  ;;  %v2476_v10 = vpop.f32.mrb[139].mxu0  ;;  %v2530_v22 = vmax.f32 %v2482_v7, 0.0 }
 0x272   : > { %v3637_v31 = vadd.f32 %v3636_v54, %v3635_v57  ;;  %v2477_v60 = vadd.f32 %v2476_v10, %v2316_v56  ;;  %v2329_v2 = vadd.f32 %v3634_v62, %v4916_v48  ;;  %v2528_v35 = vmax.f32 %v2474_v37, 0.0 }
 0x273   : > { %v2531_v9 = vmax.f32 %v2485_v27, 0.0 }
 0x274   : > { %v2529_v19 = vmax.f32 %v2477_v60, 0.0  ;;  %v2332_v59 = vadd.f32 %v3637_v31, %v4922_v12 }
 0x275   : > { %v3169_v42 = vpack.c.bf16 %v2531_v9, %v2530_v22 }
 0x276   : > { %v3164_v34 = vpack.c.bf16 %v2529_v19, %v2528_v35  ;;  %v3638_v21 = vpop.f32.mrb[140].mxu1  ;;  %v3714_v40 = vpop.f32.mrb[140].mxu0 }
 0x277   : > { %3193 = vst [vmem:[%s4950_s20 + $0x68] sm:$0xff] %v3169_v42   ;;  %v3639_v41 = vpop.f32.mrb[141].mxu1  ;;  %v2489_v23 = vpop.f32.mrb[141].mxu0 }
 0x278   : > { %3192 = vst [vmem:[%s4950_s20 + $0x60] sm:$0xff] %v3164_v34   ;;  %v3640_v45 = vadd.f32 %v3639_v41, %v3638_v21  ;;  %v2490_v14 = vadd.f32 %v2489_v23, %v2329_v2  ;;  %v3641_v36 = vpop.f32.mrb[142].mxu1  ;;  %v3715_v48 = vpop.f32.mrb[142].mxu0 }
 0x279   : > { %v3642_v25 = vpop.f32.mrb[143].mxu1  ;;  %v2492_v63 = vpop.f32.mrb[143].mxu0 }
 0x27a   : > { %v2337_v51 = vadd.f32 %v3640_v45, %v4928_v13  ;;  %v3643_v12 = vadd.f32 %v3642_v25, %v3641_v36  ;;  %v2493_v8 = vadd.f32 %v2492_v63, %v2332_v59  ;;  %v2532_v4 = vmax.f32 %v2490_v14, 0.0 }
 0x27c   : > { %v2498_v53 = vadd.f32 %v3714_v40, %v2337_v51  ;;  %v2340_v56 = vadd.f32 %v3643_v12, %v4934_v28  ;;  %v2533_v32 = vmax.f32 %v2493_v8, 0.0 }
 0x27e   : > { %v2501_v5 = vadd.f32 %v3715_v48, %v2340_v56  ;;  %v3174_v38 = vpack.c.bf16 %v2533_v32, %v2532_v4  ;;  %v2534_v44 = vmax.f32 %v2498_v53, 0.0 }
 0x280   : > { %v2535_v46 = vmax.f32 %v2501_v5, 0.0  ;;  %3194 = vst [vmem:[%s4950_s20 + $0x70] sm:$0xff] %v3174_v38  }
 0x282   : > { %v3179_v13 = vpack.c.bf16 %v2535_v46, %v2534_v44 }
 0x284   : > { %3195 = vst [vmem:[%s4950_s20 + $0x78] sm:$0xff] %v3179_v13  }
 0x285   : > { %4187 = shalt.err (!%p4184_p2)
}
 0x286   : > { %s4188_s17 = scalar_lea.hbm %s5006_s23, 2048  ;;  %s4192_s29 = scalar_lea.hbm %s5056_s3, 4096 }
 0x287   : > { %p4189_p13 = scmp.ne.s32.totalorder %s5006_s23, %s4188_s17  ;;  %p4193_p4 = scmp.lt.u32.totalorder %s5006_s23, %s5056_s3 }
 0x288   : > { %p4194_p5 = scmp.lt.u32.totalorder %s4192_s29, %s4188_s17  ;;  %p4196_p11 = scmp.lt.u32.totalorder %s4188_s17, %s5006_s23 }
 0x289   : > { %p4190_p6 = pnand %p4189_p13, %p5070_p0 }
 0x28a   : > { %p4195_p8 = por %p4194_p5, %p4193_p4 }
 0x28b   : > { %p4191_p10 = pneg %p4190_p6 }
 0x28c   : > { %p4197_p1 = por %p4196_p11, %p4195_p8 }
 0x28e   : > { %p4198_p3 = pnand %p4197_p1, %p4191_p10 }
 0x290   : > { %4201 = shalt.err (!%p4198_p3)
}
 0x291   : > { %s4254_s18 = smov 64   ;;  %s4255_s20 = smov 4  }
 0x292   : > { %3745 = dma.vmem_to_hbm [thread:$0]  (%p5070_p0), %s5008_s24, 2048, %s5006_s23, %s2697_s6, %s4254_s18, %s4254_s18, %s4255_s20  }
 0x293 PF: > { %s2725_s11 = sand.u32 1, %s4232_s12   ;;  %p5071_p7 = scmp.ne.s32.totalorder %s5061_s19, 0 }
 0x294   : > { %p5072_p9 = scmp.ge.s32.totalorder %s4244_s15, 2  ;;  %s2726_s27 = scalar_lea.sflag [#allocation4], %s2725_s11 }
 0x296   : > { %p3759_p12 = pnand %p5072_p9, %p5071_p7 }
 0x298   : > { %4227 = dma.done.wait (!%p3759_p12), %s2726_s27, 2048  }
 0x299   : > { %4229 = vsyncadd (!%p3759_p12), %s2726_s27, 4294965248  ;;  %p17_p2 = scmp.ge.s32.totalorder %s4387_s5, 4   ;;  %s5073_s12 = smov %s4236_s13 }
 0x29a   : > { %s5074_s13 = smov %s4240_s14  ;;  %s5075_s14 = smov %s4403_s8 }
 0x29b   : > { %s5076_s15 = smov %s4387_s5  ;;  %19 = sbr.rel (!%p17_p2) target bundleno = 6 (0x6), region = 85 }
 0x2a2   :  { %2731 = vsyncpa [#allocation3], 1 }
 0x2a3   :  { %2733 = vsyncpa [#allocation3 + $0x1], 1 }
 0x2a4   :  { %2734 = vsyncpa [#allocation6], 1 }
 0x2a5   :  { %2735 = vsyncpa [#allocation4], 1 }
 0x2a6   :  { %2737 = vsyncpa [#allocation4 + $0x1], 1 }

</bundles_post_ra>
